<compile_context>
chip_gen: v5e
topology: v5e:2x2
jax: 0.10.0
libtpu: 0.0.40
codegen_flags: <defaults>
</compile_context>

<pallas_src>
import functools

import jax
import jax.numpy as jnp
from jax.experimental import pallas as pl
from jax.experimental.pallas import tpu as pltpu


# --------------------------- shared math helpers (pure jnp, used in-kernel and as reference) ----

def _conv3_taps(x, w):
    """'same' k=3 conv (pad=1): x (b, L, C), w (3, C, Cout) -> (b, L, Cout) f32 (no bias/act)."""
    b, L, C = x.shape
    zero = jnp.zeros((b, 1, C), x.dtype)
    xp = jnp.concatenate([zero, x, zero], axis=1)        # pad=1 along L; stays in registers/VMEM
    acc = jnp.einsum("blc,co->blo", xp[:, 0:L, :], w[0],
                     preferred_element_type=jnp.float32)
    acc = acc + jnp.einsum("blc,co->blo", xp[:, 1:L + 1, :], w[1],
                           preferred_element_type=jnp.float32)
    acc = acc + jnp.einsum("blc,co->blo", xp[:, 2:L + 2, :], w[2],
                           preferred_element_type=jnp.float32)
    return acc


def _avgpool2(x):
    """avg_pool1d(kernel_size=2): (b, L, C) -> (b, L//2, C)."""
    b, L, C = x.shape
    x4 = x.reshape(b, L // 2, 2, C)
    return 0.5 * (x4[:, :, 0, :] + x4[:, :, 1, :])


def _convt2(x, wt, bt):
    """ConvTranspose1d(k=2, stride=2): out[:, 2l+k, :] = x[:, l, :] @ wt[k] + bt."""
    b, L, _ = x.shape
    cout = wt.shape[-1]
    y0 = jnp.einsum("blc,co->blo", x, wt[0], preferred_element_type=jnp.float32) + bt
    y1 = jnp.einsum("blc,co->blo", x, wt[1], preferred_element_type=jnp.float32) + bt
    y = jnp.concatenate([y0[:, :, None, :], y1[:, :, None, :]], axis=2)   # (b, L, 2, cout)
    return y.reshape(b, 2 * L, cout)                     # interleave; never leaves VMEM


# --------------------------- fused Pallas kernel ------------------------------------------------

def _fused_unet_kernel(*refs, n_enc, n_dec):
    # refs = [x_ref, <all weight/bias refs in order>, o_ref]
    x_ref, o_ref = refs[0], refs[-1]
    w_refs = refs[1:-1]
    pos = [0]

    def nxt():
        r = w_refs[pos[0]]
        pos[0] += 1
        return r[...]

    x = x_ref[...].astype(jnp.float32)          # (1, L, Cin) block for this batch element

    # encoder: conv+ReLU, keep skip, fused avg-pool (half-length result only)
    skips = []
    for _ in range(n_enc):
        w, b = nxt(), nxt()
        y = jnp.maximum(_conv3_taps(x, w) + b, 0.0)
        skips.append(y)
        x = _avgpool2(y)

    # mid conv
    w, b = nxt(), nxt()
    x = jnp.maximum(_conv3_taps(x, w) + b, 0.0)

    # decoder: convT (k=2,s=2) then conv over [up, skip] via split weights (no concat materialized)
    for i in range(n_dec):
        wt, bt, wcu, wcs, bc = nxt(), nxt(), nxt(), nxt(), nxt()
        up = _convt2(x, wt, bt)
        skip = skips[-1 - i]
        x = jnp.maximum(_conv3_taps(up, wcu) + _conv3_taps(skip, wcs) + bc, 0.0)

    # bottom pointwise (k=1) linear
    wb, bb = nxt(), nxt()
    out = jnp.einsum("blc,co->blo", x, wb, preferred_element_type=jnp.float32) + bb
    o_ref[...] = out.astype(o_ref.dtype)


def rep_unet1d(params, x):
    """Fused forward pass. x: (B, L, Cin) channels-last."""
    B, L, cin = x.shape
    cout = params["bottom"]["w"].shape[-1]
    n_enc, n_dec = len(params["enc"]), len(params["dec"])

    flat = []
    for p in params["enc"]:
        flat += [p["w"], p["b"]]
    flat += [params["mid"]["w"], params["mid"]["b"]]
    for p in params["dec"]:
        flat += [p["wt"], p["bt"], p["wcu"], p["wcs"], p["bc"]]
    flat += [params["bottom"]["w"], params["bottom"]["b"]]

    def wspec(a):
        nd = a.ndim
        # whole weight resident in VMEM; same block for every grid step -> fetched once
        return pl.BlockSpec(a.shape, lambda b, _nd=nd: (0,) * _nd)

    return pl.pallas_call(
        functools.partial(_fused_unet_kernel, n_enc=n_enc, n_dec=n_dec),
        out_shape=jax.ShapeDtypeStruct((B, L, cout), x.dtype),
        grid=(B,),
        in_specs=[pl.BlockSpec((1, L, cin), lambda b: (b, 0, 0))] + [wspec(a) for a in flat],
        out_specs=pl.BlockSpec((1, L, cout), lambda b: (b, 0, 0)),
        compiler_params=pltpu.CompilerParams(
            dimension_semantics=("parallel",)),   # batch axis -> both TCs on v7x
    )(x, *flat)


# --------------------------- pure-JAX reference (same math, no Pallas) --------------------------

def rep_unet1d_reference(params, x):
    x = x.astype(jnp.float32)
    skips = []
    for p in params["enc"]:
        y = jnp.maximum(_conv3_taps(x, p["w"]) + p["b"], 0.0)
        skips.append(y)
        x = _avgpool2(y)
    x = jnp.maximum(_conv3_taps(x, params["mid"]["w"]) + params["mid"]["b"], 0.0)
    for i, p in enumerate(params["dec"]):
        up = _convt2(x, p["wt"], p["bt"])
        x = jnp.maximum(_conv3_taps(up, p["wcu"]) + _conv3_taps(skips[-1 - i], p["wcs"]) + p["bc"],
                        0.0)
    return (jnp.einsum("blc,co->blo", x, params["bottom"]["w"],
                       preferred_element_type=jnp.float32) + params["bottom"]["b"])


# --------------------------- params ------------------------------------------------------------

def init_params(key, enc_chs, mid_chs, dec_chs, bottom_chs):
    keys = iter(jax.random.split(key, 64))

    def conv_w(k, ksz, cin, cout):
        # PyTorch Conv1d weight (Cout, Cin, K) maps here via transpose to (K, Cin, Cout).
        scale = 1.0 / jnp.sqrt(float(ksz * cin))
        return (scale * jax.random.normal(k, (ksz, cin, cout))).astype(jnp.float32)

    def bias(k, cout):
        return (0.1 * jax.random.normal(k, (1, cout))).astype(jnp.float32)

    params = {"enc": [], "dec": []}
    for i in range(len(enc_chs) - 1):
        params["enc"].append({
            "w": conv_w(next(keys), 3, enc_chs[i], enc_chs[i + 1]),
            "b": bias(next(keys), enc_chs[i + 1]),
        })
    params["mid"] = {
        "w": conv_w(next(keys), 3, mid_chs[0], mid_chs[1]),
        "b": bias(next(keys), mid_chs[1]),
    }
    skip_chs = list(enc_chs[1:])[::-1]  # skip-connection channel counts, last first
    for i in range(len(dec_chs) - 1):
        cin, cout = dec_chs[i], dec_chs[i + 1]
        params["dec"].append({
            "wt": conv_w(next(keys), 2, cin, cout),          # ConvTranspose1d k=2 s=2
            "bt": bias(next(keys), cout),
            "wcu": conv_w(next(keys), 3, cout, cout),         # post-"concat" conv, up-channel rows
            "wcs": conv_w(next(keys), 3, skip_chs[i], cout),  # post-"concat" conv, skip-channel rows
            "bc": bias(next(keys), cout),
        })
    params["bottom"] = {
        "w": conv_w(next(keys), 1, bottom_chs[0], bottom_chs[1])[0],  # (Cin, Cout)
        "b": bias(next(keys), bottom_chs[1]),
    }
    return params


# --------------------------- main ---------------------------------------------------------------

if __name__ == "__main__":
    enc_chs = (4, 8, 16)
    mid_chs = (16, 32)
    dec_chs = (32, 16, 8)
    bottom_chs = (8, 4)

    B, L, Cin = 2, 16, enc_chs[0]

    key = jax.random.PRNGKey(0)
    pkey, xkey = jax.random.split(key)
    params = init_params(pkey, enc_chs, mid_chs, dec_chs, bottom_chs)
    # Channels-last input; the equivalent PyTorch input would be shape (2, 4, 16).
    x = jax.random.normal(xkey, (B, L, Cin), jnp.float32)

    out = jax.block_until_ready(jax.jit(rep_unet1d)(params, x))
    ref = jax.block_until_ready(jax.jit(rep_unet1d_reference)(params, x))

    assert out.shape == (B, L, bottom_chs[1]), out.shape
    assert bool(jnp.allclose(out, ref, atol=2e-2, rtol=2e-2)), \
        float(jnp.max(jnp.abs(out - ref)))
    print("KERNEL_OK")
</pallas_src>

<mosaic_0001>
module attributes {stable_mosaic.version = 11 : i64} {
  func.func @_fused_unet_kernel(%arg0: i32, %arg1: memref<1x16x4xf32, #tpu.memory_space<vmem>>, %arg2: memref<3x4x8xf32, #tpu.memory_space<vmem>>, %arg3: memref<1x8xf32, #tpu.memory_space<vmem>>, %arg4: memref<3x8x16xf32, #tpu.memory_space<vmem>>, %arg5: memref<1x16xf32, #tpu.memory_space<vmem>>, %arg6: memref<3x16x32xf32, #tpu.memory_space<vmem>>, %arg7: memref<1x32xf32, #tpu.memory_space<vmem>>, %arg8: memref<2x32x16xf32, #tpu.memory_space<vmem>>, %arg9: memref<1x16xf32, #tpu.memory_space<vmem>>, %arg10: memref<3x16x16xf32, #tpu.memory_space<vmem>>, %arg11: memref<3x16x16xf32, #tpu.memory_space<vmem>>, %arg12: memref<1x16xf32, #tpu.memory_space<vmem>>, %arg13: memref<2x16x8xf32, #tpu.memory_space<vmem>>, %arg14: memref<1x8xf32, #tpu.memory_space<vmem>>, %arg15: memref<3x8x8xf32, #tpu.memory_space<vmem>>, %arg16: memref<3x8x8xf32, #tpu.memory_space<vmem>>, %arg17: memref<1x8xf32, #tpu.memory_space<vmem>>, %arg18: memref<8x4xf32, #tpu.memory_space<vmem>>, %arg19: memref<1x4xf32, #tpu.memory_space<vmem>>, %arg20: memref<1x16x4xf32, #tpu.memory_space<vmem>>) attributes {dimension_semantics = [#tpu.dimension_semantics<parallel>], iteration_bounds = array<i64: 2>, scalar_prefetch = 0 : i64, scratch_operands = 0 : i64, tpu.core_type = #tpu.core_type<tc>, window_params = [{transform_indices = @transform_0, window_bounds = array<i64: 1, 16, 4>}, {pipeline_mode = #tpu.pipeline_mode<synchronous>, transform_indices = @transform_1, window_bounds = array<i64: 3, 4, 8>}, {pipeline_mode = #tpu.pipeline_mode<synchronous>, transform_indices = @transform_2, window_bounds = array<i64: 1, 8>}, {pipeline_mode = #tpu.pipeline_mode<synchronous>, transform_indices = @transform_3, window_bounds = array<i64: 3, 8, 16>}, {pipeline_mode = #tpu.pipeline_mode<synchronous>, transform_indices = @transform_4, window_bounds = array<i64: 1, 16>}, {pipeline_mode = #tpu.pipeline_mode<synchronous>, transform_indices = @transform_5, window_bounds = array<i64: 3, 16, 32>}, {pipeline_mode = #tpu.pipeline_mode<synchronous>, transform_indices = @transform_6, window_bounds = array<i64: 1, 32>}, {pipeline_mode = #tpu.pipeline_mode<synchronous>, transform_indices = @transform_7, window_bounds = array<i64: 2, 32, 16>}, {pipeline_mode = #tpu.pipeline_mode<synchronous>, transform_indices = @transform_8, window_bounds = array<i64: 1, 16>}, {pipeline_mode = #tpu.pipeline_mode<synchronous>, transform_indices = @transform_9, window_bounds = array<i64: 3, 16, 16>}, {pipeline_mode = #tpu.pipeline_mode<synchronous>, transform_indices = @transform_10, window_bounds = array<i64: 3, 16, 16>}, {pipeline_mode = #tpu.pipeline_mode<synchronous>, transform_indices = @transform_11, window_bounds = array<i64: 1, 16>}, {pipeline_mode = #tpu.pipeline_mode<synchronous>, transform_indices = @transform_12, window_bounds = array<i64: 2, 16, 8>}, {pipeline_mode = #tpu.pipeline_mode<synchronous>, transform_indices = @transform_13, window_bounds = array<i64: 1, 8>}, {pipeline_mode = #tpu.pipeline_mode<synchronous>, transform_indices = @transform_14, window_bounds = array<i64: 3, 8, 8>}, {pipeline_mode = #tpu.pipeline_mode<synchronous>, transform_indices = @transform_15, window_bounds = array<i64: 3, 8, 8>}, {pipeline_mode = #tpu.pipeline_mode<synchronous>, transform_indices = @transform_16, window_bounds = array<i64: 1, 8>}, {pipeline_mode = #tpu.pipeline_mode<synchronous>, transform_indices = @transform_17, window_bounds = array<i64: 8, 4>}, {pipeline_mode = #tpu.pipeline_mode<synchronous>, transform_indices = @transform_18, window_bounds = array<i64: 1, 4>}, {transform_indices = @transform_19, window_bounds = array<i64: 1, 16, 4>}]} {
    %c0 = arith.constant 0 : index
    %c0_0 = arith.constant 0 : index
    %c0_1 = arith.constant 0 : index
    %0 = vector.load %arg1[%c0, %c0_0, %c0_1] : memref<1x16x4xf32, #tpu.memory_space<vmem>>, vector<1x16x4xf32>
    %c0_2 = arith.constant 0 : index
    %c0_3 = arith.constant 0 : index
    %c0_4 = arith.constant 0 : index
    %1 = vector.load %arg2[%c0_2, %c0_3, %c0_4] : memref<3x4x8xf32, #tpu.memory_space<vmem>>, vector<3x4x8xf32>
    %c0_5 = arith.constant 0 : index
    %c0_6 = arith.constant 0 : index
    %2 = vector.load %arg3[%c0_5, %c0_6] : memref<1x8xf32, #tpu.memory_space<vmem>>, vector<1x8xf32>
    %cst = arith.constant 0.000000e+00 : f32
    %3 = vector.broadcast %cst : f32 to vector<1x1x4xf32>
    %4 = tpu.concatenate %3, %0, %3 in 1 : vector<1x1x4xf32>, vector<1x16x4xf32>, vector<1x1x4xf32> -> vector<1x18x4xf32>
    %5 = vector.extract_strided_slice %4 {offsets = [0, 0, 0], sizes = [1, 16, 4], strides = [1, 1, 1]} : vector<1x18x4xf32> to vector<1x16x4xf32>
    %6 = vector.extract_strided_slice %1 {offsets = [0, 0, 0], sizes = [1, 4, 8], strides = [1, 1, 1]} : vector<3x4x8xf32> to vector<1x4x8xf32>
    %7 = vector.shape_cast %6 : vector<1x4x8xf32> to vector<4x8xf32>
    "tpu.trace_start"() <{level = 10 : i32, message = "blc,co->blo"}> : () -> ()
    %cst_7 = arith.constant dense<0.000000e+00> : vector<1x16x8xf32>
    %8 = tpu.matmul %5, %7, %cst_7 {dimension_numbers = #tpu.dot_dimension_numbers<[2], [0], [0, 1], [1], [0, 0, 0, 1, 1, 1], [], []>} : vector<1x16x4xf32>, vector<4x8xf32>, vector<1x16x8xf32> -> vector<1x16x8xf32>
    "tpu.trace_stop"() : () -> ()
    %9 = vector.extract_strided_slice %4 {offsets = [0, 1, 0], sizes = [1, 16, 4], strides = [1, 1, 1]} : vector<1x18x4xf32> to vector<1x16x4xf32>
    %10 = vector.extract_strided_slice %1 {offsets = [1, 0, 0], sizes = [1, 4, 8], strides = [1, 1, 1]} : vector<3x4x8xf32> to vector<1x4x8xf32>
    %11 = vector.shape_cast %10 : vector<1x4x8xf32> to vector<4x8xf32>
    "tpu.trace_start"() <{level = 10 : i32, message = "blc,co->blo"}> : () -> ()
    %cst_8 = arith.constant dense<0.000000e+00> : vector<1x16x8xf32>
    %12 = tpu.matmul %9, %11, %cst_8 {dimension_numbers = #tpu.dot_dimension_numbers<[2], [0], [0, 1], [1], [0, 0, 0, 1, 1, 1], [], []>} : vector<1x16x4xf32>, vector<4x8xf32>, vector<1x16x8xf32> -> vector<1x16x8xf32>
    "tpu.trace_stop"() : () -> ()
    %13 = arith.addf %8, %12 : vector<1x16x8xf32>
    %14 = vector.extract_strided_slice %4 {offsets = [0, 2, 0], sizes = [1, 16, 4], strides = [1, 1, 1]} : vector<1x18x4xf32> to vector<1x16x4xf32>
    %15 = vector.extract_strided_slice %1 {offsets = [2, 0, 0], sizes = [1, 4, 8], strides = [1, 1, 1]} : vector<3x4x8xf32> to vector<1x4x8xf32>
    %16 = vector.shape_cast %15 : vector<1x4x8xf32> to vector<4x8xf32>
    "tpu.trace_start"() <{level = 10 : i32, message = "blc,co->blo"}> : () -> ()
    %cst_9 = arith.constant dense<0.000000e+00> : vector<1x16x8xf32>
    %17 = tpu.matmul %14, %16, %cst_9 {dimension_numbers = #tpu.dot_dimension_numbers<[2], [0], [0, 1], [1], [0, 0, 0, 1, 1, 1], [], []>} : vector<1x16x4xf32>, vector<4x8xf32>, vector<1x16x8xf32> -> vector<1x16x8xf32>
    "tpu.trace_stop"() : () -> ()
    %18 = arith.addf %13, %17 : vector<1x16x8xf32>
    %19 = vector.shape_cast %2 : vector<1x8xf32> to vector<1x1x8xf32>
    %20 = vector.broadcast %19 : vector<1x1x8xf32> to vector<1x16x8xf32>
    %21 = arith.addf %18, %20 : vector<1x16x8xf32>
    %cst_10 = arith.constant 0.000000e+00 : f32
    %22 = vector.broadcast %cst_10 : f32 to vector<1x16x8xf32>
    %23 = arith.maximumf %21, %22 : vector<1x16x8xf32>
    %24 = vector.shape_cast %23 : vector<1x16x8xf32> to vector<1x8x2x8xf32>
    %25 = vector.extract_strided_slice %24 {offsets = [0, 0, 0, 0], sizes = [1, 8, 1, 8], strides = [1, 1, 1, 1]} : vector<1x8x2x8xf32> to vector<1x8x1x8xf32>
    %26 = vector.shape_cast %25 : vector<1x8x1x8xf32> to vector<1x8x8xf32>
    %27 = vector.extract_strided_slice %24 {offsets = [0, 0, 1, 0], sizes = [1, 8, 1, 8], strides = [1, 1, 1, 1]} : vector<1x8x2x8xf32> to vector<1x8x1x8xf32>
    %28 = vector.shape_cast %27 : vector<1x8x1x8xf32> to vector<1x8x8xf32>
    %29 = arith.addf %26, %28 : vector<1x8x8xf32>
    %cst_11 = arith.constant 5.000000e-01 : f32
    %30 = vector.broadcast %cst_11 : f32 to vector<1x8x8xf32>
    %31 = arith.mulf %30, %29 : vector<1x8x8xf32>
    %c0_12 = arith.constant 0 : index
    %c0_13 = arith.constant 0 : index
    %c0_14 = arith.constant 0 : index
    %32 = vector.load %arg4[%c0_12, %c0_13, %c0_14] : memref<3x8x16xf32, #tpu.memory_space<vmem>>, vector<3x8x16xf32>
    %c0_15 = arith.constant 0 : index
    %c0_16 = arith.constant 0 : index
    %33 = vector.load %arg5[%c0_15, %c0_16] : memref<1x16xf32, #tpu.memory_space<vmem>>, vector<1x16xf32>
    %cst_17 = arith.constant 0.000000e+00 : f32
    %34 = vector.broadcast %cst_17 : f32 to vector<1x1x8xf32>
    %35 = tpu.concatenate %34, %31, %34 in 1 : vector<1x1x8xf32>, vector<1x8x8xf32>, vector<1x1x8xf32> -> vector<1x10x8xf32>
    %36 = vector.extract_strided_slice %35 {offsets = [0, 0, 0], sizes = [1, 8, 8], strides = [1, 1, 1]} : vector<1x10x8xf32> to vector<1x8x8xf32>
    %37 = vector.extract_strided_slice %32 {offsets = [0, 0, 0], sizes = [1, 8, 16], strides = [1, 1, 1]} : vector<3x8x16xf32> to vector<1x8x16xf32>
    %38 = vector.shape_cast %37 : vector<1x8x16xf32> to vector<8x16xf32>
    "tpu.trace_start"() <{level = 10 : i32, message = "blc,co->blo"}> : () -> ()
    %cst_18 = arith.constant dense<0.000000e+00> : vector<1x8x16xf32>
    %39 = tpu.matmul %36, %38, %cst_18 {dimension_numbers = #tpu.dot_dimension_numbers<[2], [0], [0, 1], [1], [0, 0, 0, 1, 1, 1], [], []>} : vector<1x8x8xf32>, vector<8x16xf32>, vector<1x8x16xf32> -> vector<1x8x16xf32>
    "tpu.trace_stop"() : () -> ()
    %40 = vector.extract_strided_slice %35 {offsets = [0, 1, 0], sizes = [1, 8, 8], strides = [1, 1, 1]} : vector<1x10x8xf32> to vector<1x8x8xf32>
    %41 = vector.extract_strided_slice %32 {offsets = [1, 0, 0], sizes = [1, 8, 16], strides = [1, 1, 1]} : vector<3x8x16xf32> to vector<1x8x16xf32>
    %42 = vector.shape_cast %41 : vector<1x8x16xf32> to vector<8x16xf32>
    "tpu.trace_start"() <{level = 10 : i32, message = "blc,co->blo"}> : () -> ()
    %cst_19 = arith.constant dense<0.000000e+00> : vector<1x8x16xf32>
    %43 = tpu.matmul %40, %42, %cst_19 {dimension_numbers = #tpu.dot_dimension_numbers<[2], [0], [0, 1], [1], [0, 0, 0, 1, 1, 1], [], []>} : vector<1x8x8xf32>, vector<8x16xf32>, vector<1x8x16xf32> -> vector<1x8x16xf32>
    "tpu.trace_stop"() : () -> ()
    %44 = arith.addf %39, %43 : vector<1x8x16xf32>
    %45 = vector.extract_strided_slice %35 {offsets = [0, 2, 0], sizes = [1, 8, 8], strides = [1, 1, 1]} : vector<1x10x8xf32> to vector<1x8x8xf32>
    %46 = vector.extract_strided_slice %32 {offsets = [2, 0, 0], sizes = [1, 8, 16], strides = [1, 1, 1]} : vector<3x8x16xf32> to vector<1x8x16xf32>
    %47 = vector.shape_cast %46 : vector<1x8x16xf32> to vector<8x16xf32>
    "tpu.trace_start"() <{level = 10 : i32, message = "blc,co->blo"}> : () -> ()
    %cst_20 = arith.constant dense<0.000000e+00> : vector<1x8x16xf32>
    %48 = tpu.matmul %45, %47, %cst_20 {dimension_numbers = #tpu.dot_dimension_numbers<[2], [0], [0, 1], [1], [0, 0, 0, 1, 1, 1], [], []>} : vector<1x8x8xf32>, vector<8x16xf32>, vector<1x8x16xf32> -> vector<1x8x16xf32>
    "tpu.trace_stop"() : () -> ()
    %49 = arith.addf %44, %48 : vector<1x8x16xf32>
    %50 = vector.shape_cast %33 : vector<1x16xf32> to vector<1x1x16xf32>
    %51 = vector.broadcast %50 : vector<1x1x16xf32> to vector<1x8x16xf32>
    %52 = arith.addf %49, %51 : vector<1x8x16xf32>
    %cst_21 = arith.constant 0.000000e+00 : f32
    %53 = vector.broadcast %cst_21 : f32 to vector<1x8x16xf32>
    %54 = arith.maximumf %52, %53 : vector<1x8x16xf32>
    %55 = vector.shape_cast %54 : vector<1x8x16xf32> to vector<1x4x2x16xf32>
    %56 = vector.extract_strided_slice %55 {offsets = [0, 0, 0, 0], sizes = [1, 4, 1, 16], strides = [1, 1, 1, 1]} : vector<1x4x2x16xf32> to vector<1x4x1x16xf32>
    %57 = vector.shape_cast %56 : vector<1x4x1x16xf32> to vector<1x4x16xf32>
    %58 = vector.extract_strided_slice %55 {offsets = [0, 0, 1, 0], sizes = [1, 4, 1, 16], strides = [1, 1, 1, 1]} : vector<1x4x2x16xf32> to vector<1x4x1x16xf32>
    %59 = vector.shape_cast %58 : vector<1x4x1x16xf32> to vector<1x4x16xf32>
    %60 = arith.addf %57, %59 : vector<1x4x16xf32>
    %cst_22 = arith.constant 5.000000e-01 : f32
    %61 = vector.broadcast %cst_22 : f32 to vector<1x4x16xf32>
    %62 = arith.mulf %61, %60 : vector<1x4x16xf32>
    %c0_23 = arith.constant 0 : index
    %c0_24 = arith.constant 0 : index
    %c0_25 = arith.constant 0 : index
    %63 = vector.load %arg6[%c0_23, %c0_24, %c0_25] : memref<3x16x32xf32, #tpu.memory_space<vmem>>, vector<3x16x32xf32>
    %c0_26 = arith.constant 0 : index
    %c0_27 = arith.constant 0 : index
    %64 = vector.load %arg7[%c0_26, %c0_27] : memref<1x32xf32, #tpu.memory_space<vmem>>, vector<1x32xf32>
    %cst_28 = arith.constant 0.000000e+00 : f32
    %65 = vector.broadcast %cst_28 : f32 to vector<1x1x16xf32>
    %66 = tpu.concatenate %65, %62, %65 in 1 : vector<1x1x16xf32>, vector<1x4x16xf32>, vector<1x1x16xf32> -> vector<1x6x16xf32>
    %67 = vector.extract_strided_slice %66 {offsets = [0, 0, 0], sizes = [1, 4, 16], strides = [1, 1, 1]} : vector<1x6x16xf32> to vector<1x4x16xf32>
    %68 = vector.extract_strided_slice %63 {offsets = [0, 0, 0], sizes = [1, 16, 32], strides = [1, 1, 1]} : vector<3x16x32xf32> to vector<1x16x32xf32>
    %69 = vector.shape_cast %68 : vector<1x16x32xf32> to vector<16x32xf32>
    "tpu.trace_start"() <{level = 10 : i32, message = "blc,co->blo"}> : () -> ()
    %cst_29 = arith.constant dense<0.000000e+00> : vector<1x4x32xf32>
    %70 = tpu.matmul %67, %69, %cst_29 {dimension_numbers = #tpu.dot_dimension_numbers<[2], [0], [0, 1], [1], [0, 0, 0, 1, 1, 1], [], []>} : vector<1x4x16xf32>, vector<16x32xf32>, vector<1x4x32xf32> -> vector<1x4x32xf32>
    "tpu.trace_stop"() : () -> ()
    %71 = vector.extract_strided_slice %66 {offsets = [0, 1, 0], sizes = [1, 4, 16], strides = [1, 1, 1]} : vector<1x6x16xf32> to vector<1x4x16xf32>
    %72 = vector.extract_strided_slice %63 {offsets = [1, 0, 0], sizes = [1, 16, 32], strides = [1, 1, 1]} : vector<3x16x32xf32> to vector<1x16x32xf32>
    %73 = vector.shape_cast %72 : vector<1x16x32xf32> to vector<16x32xf32>
    "tpu.trace_start"() <{level = 10 : i32, message = "blc,co->blo"}> : () -> ()
    %cst_30 = arith.constant dense<0.000000e+00> : vector<1x4x32xf32>
    %74 = tpu.matmul %71, %73, %cst_30 {dimension_numbers = #tpu.dot_dimension_numbers<[2], [0], [0, 1], [1], [0, 0, 0, 1, 1, 1], [], []>} : vector<1x4x16xf32>, vector<16x32xf32>, vector<1x4x32xf32> -> vector<1x4x32xf32>
    "tpu.trace_stop"() : () -> ()
    %75 = arith.addf %70, %74 : vector<1x4x32xf32>
    %76 = vector.extract_strided_slice %66 {offsets = [0, 2, 0], sizes = [1, 4, 16], strides = [1, 1, 1]} : vector<1x6x16xf32> to vector<1x4x16xf32>
    %77 = vector.extract_strided_slice %63 {offsets = [2, 0, 0], sizes = [1, 16, 32], strides = [1, 1, 1]} : vector<3x16x32xf32> to vector<1x16x32xf32>
    %78 = vector.shape_cast %77 : vector<1x16x32xf32> to vector<16x32xf32>
    "tpu.trace_start"() <{level = 10 : i32, message = "blc,co->blo"}> : () -> ()
    %cst_31 = arith.constant dense<0.000000e+00> : vector<1x4x32xf32>
    %79 = tpu.matmul %76, %78, %cst_31 {dimension_numbers = #tpu.dot_dimension_numbers<[2], [0], [0, 1], [1], [0, 0, 0, 1, 1, 1], [], []>} : vector<1x4x16xf32>, vector<16x32xf32>, vector<1x4x32xf32> -> vector<1x4x32xf32>
    "tpu.trace_stop"() : () -> ()
    %80 = arith.addf %75, %79 : vector<1x4x32xf32>
    %81 = vector.shape_cast %64 : vector<1x32xf32> to vector<1x1x32xf32>
    %82 = vector.broadcast %81 : vector<1x1x32xf32> to vector<1x4x32xf32>
    %83 = arith.addf %80, %82 : vector<1x4x32xf32>
    %cst_32 = arith.constant 0.000000e+00 : f32
    %84 = vector.broadcast %cst_32 : f32 to vector<1x4x32xf32>
    %85 = arith.maximumf %83, %84 : vector<1x4x32xf32>
    %c0_33 = arith.constant 0 : index
    %c0_34 = arith.constant 0 : index
    %c0_35 = arith.constant 0 : index
    %86 = vector.load %arg8[%c0_33, %c0_34, %c0_35] : memref<2x32x16xf32, #tpu.memory_space<vmem>>, vector<2x32x16xf32>
    %c0_36 = arith.constant 0 : index
    %c0_37 = arith.constant 0 : index
    %87 = vector.load %arg9[%c0_36, %c0_37] : memref<1x16xf32, #tpu.memory_space<vmem>>, vector<1x16xf32>
    %c0_38 = arith.constant 0 : index
    %c0_39 = arith.constant 0 : index
    %c0_40 = arith.constant 0 : index
    %88 = vector.load %arg10[%c0_38, %c0_39, %c0_40] : memref<3x16x16xf32, #tpu.memory_space<vmem>>, vector<3x16x16xf32>
    %c0_41 = arith.constant 0 : index
    %c0_42 = arith.constant 0 : index
    %c0_43 = arith.constant 0 : index
    %89 = vector.load %arg11[%c0_41, %c0_42, %c0_43] : memref<3x16x16xf32, #tpu.memory_space<vmem>>, vector<3x16x16xf32>
    %c0_44 = arith.constant 0 : index
    %c0_45 = arith.constant 0 : index
    %90 = vector.load %arg12[%c0_44, %c0_45] : memref<1x16xf32, #tpu.memory_space<vmem>>, vector<1x16xf32>
    %91 = vector.extract_strided_slice %86 {offsets = [0, 0, 0], sizes = [1, 32, 16], strides = [1, 1, 1]} : vector<2x32x16xf32> to vector<1x32x16xf32>
    %92 = vector.shape_cast %91 : vector<1x32x16xf32> to vector<32x16xf32>
    "tpu.trace_start"() <{level = 10 : i32, message = "blc,co->blo"}> : () -> ()
    %cst_46 = arith.constant dense<0.000000e+00> : vector<1x4x16xf32>
    %93 = tpu.matmul %85, %92, %cst_46 {dimension_numbers = #tpu.dot_dimension_numbers<[2], [0], [0, 1], [1], [0, 0, 0, 1, 1, 1], [], []>} : vector<1x4x32xf32>, vector<32x16xf32>, vector<1x4x16xf32> -> vector<1x4x16xf32>
    "tpu.trace_stop"() : () -> ()
    %94 = vector.shape_cast %87 : vector<1x16xf32> to vector<1x1x16xf32>
    %95 = vector.broadcast %94 : vector<1x1x16xf32> to vector<1x4x16xf32>
    %96 = arith.addf %93, %95 : vector<1x4x16xf32>
    %97 = vector.extract_strided_slice %86 {offsets = [1, 0, 0], sizes = [1, 32, 16], strides = [1, 1, 1]} : vector<2x32x16xf32> to vector<1x32x16xf32>
    %98 = vector.shape_cast %97 : vector<1x32x16xf32> to vector<32x16xf32>
    "tpu.trace_start"() <{level = 10 : i32, message = "blc,co->blo"}> : () -> ()
    %cst_47 = arith.constant dense<0.000000e+00> : vector<1x4x16xf32>
    %99 = tpu.matmul %85, %98, %cst_47 {dimension_numbers = #tpu.dot_dimension_numbers<[2], [0], [0, 1], [1], [0, 0, 0, 1, 1, 1], [], []>} : vector<1x4x32xf32>, vector<32x16xf32>, vector<1x4x16xf32> -> vector<1x4x16xf32>
    "tpu.trace_stop"() : () -> ()
    %100 = vector.shape_cast %87 : vector<1x16xf32> to vector<1x1x16xf32>
    %101 = vector.broadcast %100 : vector<1x1x16xf32> to vector<1x4x16xf32>
    %102 = arith.addf %99, %101 : vector<1x4x16xf32>
    %103 = vector.shape_cast %96 : vector<1x4x16xf32> to vector<1x4x1x16xf32>
    %104 = vector.shape_cast %102 : vector<1x4x16xf32> to vector<1x4x1x16xf32>
    %105 = tpu.concatenate %103, %104 in 2 : vector<1x4x1x16xf32>, vector<1x4x1x16xf32> -> vector<1x4x2x16xf32>
    %106 = vector.shape_cast %105 : vector<1x4x2x16xf32> to vector<1x8x16xf32>
    %cst_48 = arith.constant 0.000000e+00 : f32
    %107 = vector.broadcast %cst_48 : f32 to vector<1x1x16xf32>
    %108 = tpu.concatenate %107, %106, %107 in 1 : vector<1x1x16xf32>, vector<1x8x16xf32>, vector<1x1x16xf32> -> vector<1x10x16xf32>
    %109 = vector.extract_strided_slice %108 {offsets = [0, 0, 0], sizes = [1, 8, 16], strides = [1, 1, 1]} : vector<1x10x16xf32> to vector<1x8x16xf32>
    %110 = vector.extract_strided_slice %88 {offsets = [0, 0, 0], sizes = [1, 16, 16], strides = [1, 1, 1]} : vector<3x16x16xf32> to vector<1x16x16xf32>
    %111 = vector.shape_cast %110 : vector<1x16x16xf32> to vector<16x16xf32>
    "tpu.trace_start"() <{level = 10 : i32, message = "blc,co->blo"}> : () -> ()
    %cst_49 = arith.constant dense<0.000000e+00> : vector<1x8x16xf32>
    %112 = tpu.matmul %109, %111, %cst_49 {dimension_numbers = #tpu.dot_dimension_numbers<[2], [0], [0, 1], [1], [0, 0, 0, 1, 1, 1], [], []>} : vector<1x8x16xf32>, vector<16x16xf32>, vector<1x8x16xf32> -> vector<1x8x16xf32>
    "tpu.trace_stop"() : () -> ()
    %113 = vector.extract_strided_slice %108 {offsets = [0, 1, 0], sizes = [1, 8, 16], strides = [1, 1, 1]} : vector<1x10x16xf32> to vector<1x8x16xf32>
    %114 = vector.extract_strided_slice %88 {offsets = [1, 0, 0], sizes = [1, 16, 16], strides = [1, 1, 1]} : vector<3x16x16xf32> to vector<1x16x16xf32>
    %115 = vector.shape_cast %114 : vector<1x16x16xf32> to vector<16x16xf32>
    "tpu.trace_start"() <{level = 10 : i32, message = "blc,co->blo"}> : () -> ()
    %cst_50 = arith.constant dense<0.000000e+00> : vector<1x8x16xf32>
    %116 = tpu.matmul %113, %115, %cst_50 {dimension_numbers = #tpu.dot_dimension_numbers<[2], [0], [0, 1], [1], [0, 0, 0, 1, 1, 1], [], []>} : vector<1x8x16xf32>, vector<16x16xf32>, vector<1x8x16xf32> -> vector<1x8x16xf32>
    "tpu.trace_stop"() : () -> ()
    %117 = arith.addf %112, %116 : vector<1x8x16xf32>
    %118 = vector.extract_strided_slice %108 {offsets = [0, 2, 0], sizes = [1, 8, 16], strides = [1, 1, 1]} : vector<1x10x16xf32> to vector<1x8x16xf32>
    %119 = vector.extract_strided_slice %88 {offsets = [2, 0, 0], sizes = [1, 16, 16], strides = [1, 1, 1]} : vector<3x16x16xf32> to vector<1x16x16xf32>
    %120 = vector.shape_cast %119 : vector<1x16x16xf32> to vector<16x16xf32>
    "tpu.trace_start"() <{level = 10 : i32, message = "blc,co->blo"}> : () -> ()
    %cst_51 = arith.constant dense<0.000000e+00> : vector<1x8x16xf32>
    %121 = tpu.matmul %118, %120, %cst_51 {dimension_numbers = #tpu.dot_dimension_numbers<[2], [0], [0, 1], [1], [0, 0, 0, 1, 1, 1], [], []>} : vector<1x8x16xf32>, vector<16x16xf32>, vector<1x8x16xf32> -> vector<1x8x16xf32>
    "tpu.trace_stop"() : () -> ()
    %122 = arith.addf %117, %121 : vector<1x8x16xf32>
    %cst_52 = arith.constant 0.000000e+00 : f32
    %123 = vector.broadcast %cst_52 : f32 to vector<1x1x16xf32>
    %124 = tpu.concatenate %123, %54, %123 in 1 : vector<1x1x16xf32>, vector<1x8x16xf32>, vector<1x1x16xf32> -> vector<1x10x16xf32>
    %125 = vector.extract_strided_slice %124 {offsets = [0, 0, 0], sizes = [1, 8, 16], strides = [1, 1, 1]} : vector<1x10x16xf32> to vector<1x8x16xf32>
    %126 = vector.extract_strided_slice %89 {offsets = [0, 0, 0], sizes = [1, 16, 16], strides = [1, 1, 1]} : vector<3x16x16xf32> to vector<1x16x16xf32>
    %127 = vector.shape_cast %126 : vector<1x16x16xf32> to vector<16x16xf32>
    "tpu.trace_start"() <{level = 10 : i32, message = "blc,co->blo"}> : () -> ()
    %cst_53 = arith.constant dense<0.000000e+00> : vector<1x8x16xf32>
    %128 = tpu.matmul %125, %127, %cst_53 {dimension_numbers = #tpu.dot_dimension_numbers<[2], [0], [0, 1], [1], [0, 0, 0, 1, 1, 1], [], []>} : vector<1x8x16xf32>, vector<16x16xf32>, vector<1x8x16xf32> -> vector<1x8x16xf32>
    "tpu.trace_stop"() : () -> ()
    %129 = vector.extract_strided_slice %124 {offsets = [0, 1, 0], sizes = [1, 8, 16], strides = [1, 1, 1]} : vector<1x10x16xf32> to vector<1x8x16xf32>
    %130 = vector.extract_strided_slice %89 {offsets = [1, 0, 0], sizes = [1, 16, 16], strides = [1, 1, 1]} : vector<3x16x16xf32> to vector<1x16x16xf32>
    %131 = vector.shape_cast %130 : vector<1x16x16xf32> to vector<16x16xf32>
    "tpu.trace_start"() <{level = 10 : i32, message = "blc,co->blo"}> : () -> ()
    %cst_54 = arith.constant dense<0.000000e+00> : vector<1x8x16xf32>
    %132 = tpu.matmul %129, %131, %cst_54 {dimension_numbers = #tpu.dot_dimension_numbers<[2], [0], [0, 1], [1], [0, 0, 0, 1, 1, 1], [], []>} : vector<1x8x16xf32>, vector<16x16xf32>, vector<1x8x16xf32> -> vector<1x8x16xf32>
    "tpu.trace_stop"() : () -> ()
    %133 = arith.addf %128, %132 : vector<1x8x16xf32>
    %134 = vector.extract_strided_slice %124 {offsets = [0, 2, 0], sizes = [1, 8, 16], strides = [1, 1, 1]} : vector<1x10x16xf32> to vector<1x8x16xf32>
    %135 = vector.extract_strided_slice %89 {offsets = [2, 0, 0], sizes = [1, 16, 16], strides = [1, 1, 1]} : vector<3x16x16xf32> to vector<1x16x16xf32>
    %136 = vector.shape_cast %135 : vector<1x16x16xf32> to vector<16x16xf32>
    "tpu.trace_start"() <{level = 10 : i32, message = "blc,co->blo"}> : () -> ()
    %cst_55 = arith.constant dense<0.000000e+00> : vector<1x8x16xf32>
    %137 = tpu.matmul %134, %136, %cst_55 {dimension_numbers = #tpu.dot_dimension_numbers<[2], [0], [0, 1], [1], [0, 0, 0, 1, 1, 1], [], []>} : vector<1x8x16xf32>, vector<16x16xf32>, vector<1x8x16xf32> -> vector<1x8x16xf32>
    "tpu.trace_stop"() : () -> ()
    %138 = arith.addf %133, %137 : vector<1x8x16xf32>
    %139 = arith.addf %122, %138 : vector<1x8x16xf32>
    %140 = vector.shape_cast %90 : vector<1x16xf32> to vector<1x1x16xf32>
    %141 = vector.broadcast %140 : vector<1x1x16xf32> to vector<1x8x16xf32>
    %142 = arith.addf %139, %141 : vector<1x8x16xf32>
    %cst_56 = arith.constant 0.000000e+00 : f32
    %143 = vector.broadcast %cst_56 : f32 to vector<1x8x16xf32>
    %144 = arith.maximumf %142, %143 : vector<1x8x16xf32>
    %c0_57 = arith.constant 0 : index
    %c0_58 = arith.constant 0 : index
    %c0_59 = arith.constant 0 : index
    %145 = vector.load %arg13[%c0_57, %c0_58, %c0_59] : memref<2x16x8xf32, #tpu.memory_space<vmem>>, vector<2x16x8xf32>
    %c0_60 = arith.constant 0 : index
    %c0_61 = arith.constant 0 : index
    %146 = vector.load %arg14[%c0_60, %c0_61] : memref<1x8xf32, #tpu.memory_space<vmem>>, vector<1x8xf32>
    %c0_62 = arith.constant 0 : index
    %c0_63 = arith.constant 0 : index
    %c0_64 = arith.constant 0 : index
    %147 = vector.load %arg15[%c0_62, %c0_63, %c0_64] : memref<3x8x8xf32, #tpu.memory_space<vmem>>, vector<3x8x8xf32>
    %c0_65 = arith.constant 0 : index
    %c0_66 = arith.constant 0 : index
    %c0_67 = arith.constant 0 : index
    %148 = vector.load %arg16[%c0_65, %c0_66, %c0_67] : memref<3x8x8xf32, #tpu.memory_space<vmem>>, vector<3x8x8xf32>
    %c0_68 = arith.constant 0 : index
    %c0_69 = arith.constant 0 : index
    %149 = vector.load %arg17[%c0_68, %c0_69] : memref<1x8xf32, #tpu.memory_space<vmem>>, vector<1x8xf32>
    %150 = vector.extract_strided_slice %145 {offsets = [0, 0, 0], sizes = [1, 16, 8], strides = [1, 1, 1]} : vector<2x16x8xf32> to vector<1x16x8xf32>
    %151 = vector.shape_cast %150 : vector<1x16x8xf32> to vector<16x8xf32>
    "tpu.trace_start"() <{level = 10 : i32, message = "blc,co->blo"}> : () -> ()
    %cst_70 = arith.constant dense<0.000000e+00> : vector<1x8x8xf32>
    %152 = tpu.matmul %144, %151, %cst_70 {dimension_numbers = #tpu.dot_dimension_numbers<[2], [0], [0, 1], [1], [0, 0, 0, 1, 1, 1], [], []>} : vector<1x8x16xf32>, vector<16x8xf32>, vector<1x8x8xf32> -> vector<1x8x8xf32>
    "tpu.trace_stop"() : () -> ()
    %153 = vector.shape_cast %146 : vector<1x8xf32> to vector<1x1x8xf32>
    %154 = vector.broadcast %153 : vector<1x1x8xf32> to vector<1x8x8xf32>
    %155 = arith.addf %152, %154 : vector<1x8x8xf32>
    %156 = vector.extract_strided_slice %145 {offsets = [1, 0, 0], sizes = [1, 16, 8], strides = [1, 1, 1]} : vector<2x16x8xf32> to vector<1x16x8xf32>
    %157 = vector.shape_cast %156 : vector<1x16x8xf32> to vector<16x8xf32>
    "tpu.trace_start"() <{level = 10 : i32, message = "blc,co->blo"}> : () -> ()
    %cst_71 = arith.constant dense<0.000000e+00> : vector<1x8x8xf32>
    %158 = tpu.matmul %144, %157, %cst_71 {dimension_numbers = #tpu.dot_dimension_numbers<[2], [0], [0, 1], [1], [0, 0, 0, 1, 1, 1], [], []>} : vector<1x8x16xf32>, vector<16x8xf32>, vector<1x8x8xf32> -> vector<1x8x8xf32>
    "tpu.trace_stop"() : () -> ()
    %159 = vector.shape_cast %146 : vector<1x8xf32> to vector<1x1x8xf32>
    %160 = vector.broadcast %159 : vector<1x1x8xf32> to vector<1x8x8xf32>
    %161 = arith.addf %158, %160 : vector<1x8x8xf32>
    %162 = vector.shape_cast %155 : vector<1x8x8xf32> to vector<1x8x1x8xf32>
    %163 = vector.shape_cast %161 : vector<1x8x8xf32> to vector<1x8x1x8xf32>
    %164 = tpu.concatenate %162, %163 in 2 : vector<1x8x1x8xf32>, vector<1x8x1x8xf32> -> vector<1x8x2x8xf32>
    %165 = vector.shape_cast %164 : vector<1x8x2x8xf32> to vector<1x16x8xf32>
    %cst_72 = arith.constant 0.000000e+00 : f32
    %166 = vector.broadcast %cst_72 : f32 to vector<1x1x8xf32>
    %167 = tpu.concatenate %166, %165, %166 in 1 : vector<1x1x8xf32>, vector<1x16x8xf32>, vector<1x1x8xf32> -> vector<1x18x8xf32>
    %168 = vector.extract_strided_slice %167 {offsets = [0, 0, 0], sizes = [1, 16, 8], strides = [1, 1, 1]} : vector<1x18x8xf32> to vector<1x16x8xf32>
    %169 = vector.extract_strided_slice %147 {offsets = [0, 0, 0], sizes = [1, 8, 8], strides = [1, 1, 1]} : vector<3x8x8xf32> to vector<1x8x8xf32>
    %170 = vector.shape_cast %169 : vector<1x8x8xf32> to vector<8x8xf32>
    "tpu.trace_start"() <{level = 10 : i32, message = "blc,co->blo"}> : () -> ()
    %cst_73 = arith.constant dense<0.000000e+00> : vector<1x16x8xf32>
    %171 = tpu.matmul %168, %170, %cst_73 {dimension_numbers = #tpu.dot_dimension_numbers<[2], [0], [0, 1], [1], [0, 0, 0, 1, 1, 1], [], []>} : vector<1x16x8xf32>, vector<8x8xf32>, vector<1x16x8xf32> -> vector<1x16x8xf32>
    "tpu.trace_stop"() : () -> ()
    %172 = vector.extract_strided_slice %167 {offsets = [0, 1, 0], sizes = [1, 16, 8], strides = [1, 1, 1]} : vector<1x18x8xf32> to vector<1x16x8xf32>
    %173 = vector.extract_strided_slice %147 {offsets = [1, 0, 0], sizes = [1, 8, 8], strides = [1, 1, 1]} : vector<3x8x8xf32> to vector<1x8x8xf32>
    %174 = vector.shape_cast %173 : vector<1x8x8xf32> to vector<8x8xf32>
    "tpu.trace_start"() <{level = 10 : i32, message = "blc,co->blo"}> : () -> ()
    %cst_74 = arith.constant dense<0.000000e+00> : vector<1x16x8xf32>
    %175 = tpu.matmul %172, %174, %cst_74 {dimension_numbers = #tpu.dot_dimension_numbers<[2], [0], [0, 1], [1], [0, 0, 0, 1, 1, 1], [], []>} : vector<1x16x8xf32>, vector<8x8xf32>, vector<1x16x8xf32> -> vector<1x16x8xf32>
    "tpu.trace_stop"() : () -> ()
    %176 = arith.addf %171, %175 : vector<1x16x8xf32>
    %177 = vector.extract_strided_slice %167 {offsets = [0, 2, 0], sizes = [1, 16, 8], strides = [1, 1, 1]} : vector<1x18x8xf32> to vector<1x16x8xf32>
    %178 = vector.extract_strided_slice %147 {offsets = [2, 0, 0], sizes = [1, 8, 8], strides = [1, 1, 1]} : vector<3x8x8xf32> to vector<1x8x8xf32>
    %179 = vector.shape_cast %178 : vector<1x8x8xf32> to vector<8x8xf32>
    "tpu.trace_start"() <{level = 10 : i32, message = "blc,co->blo"}> : () -> ()
    %cst_75 = arith.constant dense<0.000000e+00> : vector<1x16x8xf32>
    %180 = tpu.matmul %177, %179, %cst_75 {dimension_numbers = #tpu.dot_dimension_numbers<[2], [0], [0, 1], [1], [0, 0, 0, 1, 1, 1], [], []>} : vector<1x16x8xf32>, vector<8x8xf32>, vector<1x16x8xf32> -> vector<1x16x8xf32>
    "tpu.trace_stop"() : () -> ()
    %181 = arith.addf %176, %180 : vector<1x16x8xf32>
    %cst_76 = arith.constant 0.000000e+00 : f32
    %182 = vector.broadcast %cst_76 : f32 to vector<1x1x8xf32>
    %183 = tpu.concatenate %182, %23, %182 in 1 : vector<1x1x8xf32>, vector<1x16x8xf32>, vector<1x1x8xf32> -> vector<1x18x8xf32>
    %184 = vector.extract_strided_slice %183 {offsets = [0, 0, 0], sizes = [1, 16, 8], strides = [1, 1, 1]} : vector<1x18x8xf32> to vector<1x16x8xf32>
    %185 = vector.extract_strided_slice %148 {offsets = [0, 0, 0], sizes = [1, 8, 8], strides = [1, 1, 1]} : vector<3x8x8xf32> to vector<1x8x8xf32>
    %186 = vector.shape_cast %185 : vector<1x8x8xf32> to vector<8x8xf32>
    "tpu.trace_start"() <{level = 10 : i32, message = "blc,co->blo"}> : () -> ()
    %cst_77 = arith.constant dense<0.000000e+00> : vector<1x16x8xf32>
    %187 = tpu.matmul %184, %186, %cst_77 {dimension_numbers = #tpu.dot_dimension_numbers<[2], [0], [0, 1], [1], [0, 0, 0, 1, 1, 1], [], []>} : vector<1x16x8xf32>, vector<8x8xf32>, vector<1x16x8xf32> -> vector<1x16x8xf32>
    "tpu.trace_stop"() : () -> ()
    %188 = vector.extract_strided_slice %183 {offsets = [0, 1, 0], sizes = [1, 16, 8], strides = [1, 1, 1]} : vector<1x18x8xf32> to vector<1x16x8xf32>
    %189 = vector.extract_strided_slice %148 {offsets = [1, 0, 0], sizes = [1, 8, 8], strides = [1, 1, 1]} : vector<3x8x8xf32> to vector<1x8x8xf32>
    %190 = vector.shape_cast %189 : vector<1x8x8xf32> to vector<8x8xf32>
    "tpu.trace_start"() <{level = 10 : i32, message = "blc,co->blo"}> : () -> ()
    %cst_78 = arith.constant dense<0.000000e+00> : vector<1x16x8xf32>
    %191 = tpu.matmul %188, %190, %cst_78 {dimension_numbers = #tpu.dot_dimension_numbers<[2], [0], [0, 1], [1], [0, 0, 0, 1, 1, 1], [], []>} : vector<1x16x8xf32>, vector<8x8xf32>, vector<1x16x8xf32> -> vector<1x16x8xf32>
    "tpu.trace_stop"() : () -> ()
    %192 = arith.addf %187, %191 : vector<1x16x8xf32>
    %193 = vector.extract_strided_slice %183 {offsets = [0, 2, 0], sizes = [1, 16, 8], strides = [1, 1, 1]} : vector<1x18x8xf32> to vector<1x16x8xf32>
    %194 = vector.extract_strided_slice %148 {offsets = [2, 0, 0], sizes = [1, 8, 8], strides = [1, 1, 1]} : vector<3x8x8xf32> to vector<1x8x8xf32>
    %195 = vector.shape_cast %194 : vector<1x8x8xf32> to vector<8x8xf32>
    "tpu.trace_start"() <{level = 10 : i32, message = "blc,co->blo"}> : () -> ()
    %cst_79 = arith.constant dense<0.000000e+00> : vector<1x16x8xf32>
    %196 = tpu.matmul %193, %195, %cst_79 {dimension_numbers = #tpu.dot_dimension_numbers<[2], [0], [0, 1], [1], [0, 0, 0, 1, 1, 1], [], []>} : vector<1x16x8xf32>, vector<8x8xf32>, vector<1x16x8xf32> -> vector<1x16x8xf32>
    "tpu.trace_stop"() : () -> ()
    %197 = arith.addf %192, %196 : vector<1x16x8xf32>
    %198 = arith.addf %181, %197 : vector<1x16x8xf32>
    %199 = vector.shape_cast %149 : vector<1x8xf32> to vector<1x1x8xf32>
    %200 = vector.broadcast %199 : vector<1x1x8xf32> to vector<1x16x8xf32>
    %201 = arith.addf %198, %200 : vector<1x16x8xf32>
    %cst_80 = arith.constant 0.000000e+00 : f32
    %202 = vector.broadcast %cst_80 : f32 to vector<1x16x8xf32>
    %203 = arith.maximumf %201, %202 : vector<1x16x8xf32>
    %c0_81 = arith.constant 0 : index
    %c0_82 = arith.constant 0 : index
    %204 = vector.load %arg18[%c0_81, %c0_82] : memref<8x4xf32, #tpu.memory_space<vmem>>, vector<8x4xf32>
    %c0_83 = arith.constant 0 : index
    %c0_84 = arith.constant 0 : index
    %205 = vector.load %arg19[%c0_83, %c0_84] : memref<1x4xf32, #tpu.memory_space<vmem>>, vector<1x4xf32>
    "tpu.trace_start"() <{level = 10 : i32, message = "blc,co->blo"}> : () -> ()
    %cst_85 = arith.constant dense<0.000000e+00> : vector<1x16x4xf32>
    %206 = tpu.matmul %203, %204, %cst_85 {dimension_numbers = #tpu.dot_dimension_numbers<[2], [0], [0, 1], [1], [0, 0, 0, 1, 1, 1], [], []>} : vector<1x16x8xf32>, vector<8x4xf32>, vector<1x16x4xf32> -> vector<1x16x4xf32>
    "tpu.trace_stop"() : () -> ()
    %207 = vector.shape_cast %205 : vector<1x4xf32> to vector<1x1x4xf32>
    %208 = vector.broadcast %207 : vector<1x1x4xf32> to vector<1x16x4xf32>
    %209 = arith.addf %206, %208 : vector<1x16x4xf32>
    %c0_86 = arith.constant 0 : index
    %c0_87 = arith.constant 0 : index
    %c0_88 = arith.constant 0 : index
    %210 = vector.load %arg20[%c0_86, %c0_87, %c0_88] : memref<1x16x4xf32, #tpu.memory_space<vmem>>, vector<1x16x4xf32>
    tpu.vector_store %arg20[%c0_86, %c0_87, %c0_88], %209 {strides = array<i32>} : memref<1x16x4xf32, #tpu.memory_space<vmem>>, vector<1x16x4xf32>,
    return
  }
  func.func @transform_0(%arg0: i32) -> (i32, i32, i32) {
    %c0_i32 = arith.constant 0 : i32
    %c0_i32_0 = arith.constant 0 : i32
    %c0_i32_1 = arith.constant 0 : i32
    return %arg0, %c0_i32, %c0_i32_0 : i32, i32, i32
  }
  func.func @transform_1(%arg0: i32) -> (i32, i32, i32) {
    %c0_i32 = arith.constant 0 : i32
    %c0_i32_0 = arith.constant 0 : i32
    %c0_i32_1 = arith.constant 0 : i32
    %c0_i32_2 = arith.constant 0 : i32
    return %c0_i32, %c0_i32_0, %c0_i32_1 : i32, i32, i32
  }
  func.func @transform_2(%arg0: i32) -> (i32, i32) {
    %c0_i32 = arith.constant 0 : i32
    %c0_i32_0 = arith.constant 0 : i32
    %c0_i32_1 = arith.constant 0 : i32
    return %c0_i32, %c0_i32_0 : i32, i32
  }
  func.func @transform_3(%arg0: i32) -> (i32, i32, i32) {
    %c0_i32 = arith.constant 0 : i32
    %c0_i32_0 = arith.constant 0 : i32
    %c0_i32_1 = arith.constant 0 : i32
    %c0_i32_2 = arith.constant 0 : i32
    return %c0_i32, %c0_i32_0, %c0_i32_1 : i32, i32, i32
  }
  func.func @transform_4(%arg0: i32) -> (i32, i32) {
    %c0_i32 = arith.constant 0 : i32
    %c0_i32_0 = arith.constant 0 : i32
    %c0_i32_1 = arith.constant 0 : i32
    return %c0_i32, %c0_i32_0 : i32, i32
  }
  func.func @transform_5(%arg0: i32) -> (i32, i32, i32) {
    %c0_i32 = arith.constant 0 : i32
    %c0_i32_0 = arith.constant 0 : i32
    %c0_i32_1 = arith.constant 0 : i32
    %c0_i32_2 = arith.constant 0 : i32
    return %c0_i32, %c0_i32_0, %c0_i32_1 : i32, i32, i32
  }
  func.func @transform_6(%arg0: i32) -> (i32, i32) {
    %c0_i32 = arith.constant 0 : i32
    %c0_i32_0 = arith.constant 0 : i32
    %c0_i32_1 = arith.constant 0 : i32
    return %c0_i32, %c0_i32_0 : i32, i32
  }
  func.func @transform_7(%arg0: i32) -> (i32, i32, i32) {
    %c0_i32 = arith.constant 0 : i32
    %c0_i32_0 = arith.constant 0 : i32
    %c0_i32_1 = arith.constant 0 : i32
    %c0_i32_2 = arith.constant 0 : i32
    return %c0_i32, %c0_i32_0, %c0_i32_1 : i32, i32, i32
  }
  func.func @transform_8(%arg0: i32) -> (i32, i32) {
    %c0_i32 = arith.constant 0 : i32
    %c0_i32_0 = arith.constant 0 : i32
    %c0_i32_1 = arith.constant 0 : i32
    return %c0_i32, %c0_i32_0 : i32, i32
  }
  func.func @transform_9(%arg0: i32) -> (i32, i32, i32) {
    %c0_i32 = arith.constant 0 : i32
    %c0_i32_0 = arith.constant 0 : i32
    %c0_i32_1 = arith.constant 0 : i32
    %c0_i32_2 = arith.constant 0 : i32
    return %c0_i32, %c0_i32_0, %c0_i32_1 : i32, i32, i32
  }
  func.func @transform_10(%arg0: i32) -> (i32, i32, i32) {
    %c0_i32 = arith.constant 0 : i32
    %c0_i32_0 = arith.constant 0 : i32
    %c0_i32_1 = arith.constant 0 : i32
    %c0_i32_2 = arith.constant 0 : i32
    return %c0_i32, %c0_i32_0, %c0_i32_1 : i32, i32, i32
  }
  func.func @transform_11(%arg0: i32) -> (i32, i32) {
    %c0_i32 = arith.constant 0 : i32
    %c0_i32_0 = arith.constant 0 : i32
    %c0_i32_1 = arith.constant 0 : i32
    return %c0_i32, %c0_i32_0 : i32, i32
  }
  func.func @transform_12(%arg0: i32) -> (i32, i32, i32) {
    %c0_i32 = arith.constant 0 : i32
    %c0_i32_0 = arith.constant 0 : i32
    %c0_i32_1 = arith.constant 0 : i32
    %c0_i32_2 = arith.constant 0 : i32
    return %c0_i32, %c0_i32_0, %c0_i32_1 : i32, i32, i32
  }
  func.func @transform_13(%arg0: i32) -> (i32, i32) {
    %c0_i32 = arith.constant 0 : i32
    %c0_i32_0 = arith.constant 0 : i32
    %c0_i32_1 = arith.constant 0 : i32
    return %c0_i32, %c0_i32_0 : i32, i32
  }
  func.func @transform_14(%arg0: i32) -> (i32, i32, i32) {
    %c0_i32 = arith.constant 0 : i32
    %c0_i32_0 = arith.constant 0 : i32
    %c0_i32_1 = arith.constant 0 : i32
    %c0_i32_2 = arith.constant 0 : i32
    return %c0_i32, %c0_i32_0, %c0_i32_1 : i32, i32, i32
  }
  func.func @transform_15(%arg0: i32) -> (i32, i32, i32) {
    %c0_i32 = arith.constant 0 : i32
    %c0_i32_0 = arith.constant 0 : i32
    %c0_i32_1 = arith.constant 0 : i32
    %c0_i32_2 = arith.constant 0 : i32
    return %c0_i32, %c0_i32_0, %c0_i32_1 : i32, i32, i32
  }
  func.func @transform_16(%arg0: i32) -> (i32, i32) {
    %c0_i32 = arith.constant 0 : i32
    %c0_i32_0 = arith.constant 0 : i32
    %c0_i32_1 = arith.constant 0 : i32
    return %c0_i32, %c0_i32_0 : i32, i32
  }
  func.func @transform_17(%arg0: i32) -> (i32, i32) {
    %c0_i32 = arith.constant 0 : i32
    %c0_i32_0 = arith.constant 0 : i32
    %c0_i32_1 = arith.constant 0 : i32
    return %c0_i32, %c0_i32_0 : i32, i32
  }
  func.func @transform_18(%arg0: i32) -> (i32, i32) {
    %c0_i32 = arith.constant 0 : i32
    %c0_i32_0 = arith.constant 0 : i32
    %c0_i32_1 = arith.constant 0 : i32
    return %c0_i32, %c0_i32_0 : i32, i32
  }
  func.func @transform_19(%arg0: i32) -> (i32, i32, i32) {
    %c0_i32 = arith.constant 0 : i32
    %c0_i32_0 = arith.constant 0 : i32
    %c0_i32_1 = arith.constant 0 : i32
    return %arg0, %c0_i32, %c0_i32_0 : i32, i32, i32
  }
}

</mosaic_0001>

<bundles_post_ra>
// kernel: rep_unet1d.1
= control target key start
LH: loop header
LB: loop body
LE: loop exit
PB: predicated region body
PF: predicated region fallthrough
CT: control target
= control target key end

     0   :  { %s2684_s0 = inlined_call_operand.vmem [shape: f32[2,16,4], index: 0, kind: input, shape index: {}]   ;;  %s2685_s1 = inlined_call_operand.hbm [shape: f32[3,4,8], index: 1, kind: input, shape index: {}]   ;;  %s2686_s2 = inlined_call_operand.vmem [shape: f32[1,8], index: 2, kind: input, shape index: {}]   ;;  %s2687_s3 = inlined_call_operand.hbm [shape: f32[3,8,16], index: 3, kind: input, shape index: {}]   ;;  %s2688_s4 = inlined_call_operand.vmem [shape: f32[1,16], index: 4, kind: input, shape index: {}]   ;;  %s2689_s5 = inlined_call_operand.vmem [shape: f32[3,16,32], index: 5, kind: input, shape index: {}]   ;;  %s2690_s6 = inlined_call_operand.vmem [shape: f32[1,32], index: 6, kind: input, shape index: {}]   ;;  %s2691_s7 = inlined_call_operand.vmem [shape: f32[2,32,16], index: 7, kind: input, shape index: {}]   ;;  %s2692_s8 = inlined_call_operand.vmem [shape: f32[1,16], index: 8, kind: input, shape index: {}]   ;;  %s2693_s9 = inlined_call_operand.vmem [shape: f32[3,16,16], index: 9, kind: input, shape index: {}]   ;;  %s2694_s10 = inlined_call_operand.vmem [shape: f32[3,16,16], index: 10, kind: input, shape index: {}]   ;;  %s2695_s11 = inlined_call_operand.vmem [shape: f32[1,16], index: 11, kind: input, shape index: {}]   ;;  %s2696_s12 = inlined_call_operand.vmem [shape: f32[2,16,8], index: 12, kind: input, shape index: {}]   ;;  %s2697_s13 = inlined_call_operand.vmem [shape: f32[1,8], index: 13, kind: input, shape index: {}]   ;;  %s2698_s14 = inlined_call_operand.hbm [shape: f32[3,8,8], index: 14, kind: input, shape index: {}]   ;;  %s2699_s15 = inlined_call_operand.hbm [shape: f32[3,8,8], index: 15, kind: input, shape index: {}]   ;;  %s2700_s16 = inlined_call_operand.hbm [shape: f32[1,8], index: 16, kind: input, shape index: {}]   ;;  %s2701_s17 = inlined_call_operand.vmem [shape: f32[8,4], index: 17, kind: input, shape index: {}]   ;;  %s2702_s18 = inlined_call_operand.hbm [shape: f32[1,4], index: 18, kind: input, shape index: {}]   ;;  %s2703_s19 = inlined_call_operand.vmem [shape: f32[2,16,4], index: 19, kind: output, shape index: {}]  }
   0x1   :  { %2705 = sst [smem:[#allocation17_spill]] %s2684_s0 }
   0x2   :  { %2706 = sst [smem:[#allocation18_spill]] %s2685_s1 }
   0x3   :  { %2707 = sst [smem:[#allocation19_spill]] %s2686_s2 }
   0x4   :  { %2708 = sst [smem:[#allocation20_spill]] %s2687_s3 }
   0x5   :  { %2709 = sst [smem:[#allocation21_spill]] %s2695_s11 }
   0x6   :  { %2710 = sst [smem:[#allocation22_spill]] %s2697_s13 }
   0x7   :  { %2711 = sst [smem:[#allocation23_spill]] %s2699_s15 }
   0x8   :  { %2712 = sst [smem:[#allocation24_spill]] %s2701_s17 }
   0x9   :  { %2713 = sst [smem:[#allocation25_spill]] %s2703_s19 }
   0xa   :  { %24 = vsyncpa [#allocation3], 0 }
   0xb   :  { %25 = vsyncpa [#allocation5], 0 }
   0xc   :  { %26 = vsyncpa [#allocation8], 0 }
   0xd   :  { %27 = vsyncpa [#allocation11], 0  ;;  %s2354_s0 = smov 0  }
   0xe LB: > { %2714 = sst [smem:[#allocation16_spill]] %s2242_s0  ;;  %s2363_s22 = sadd.s32 4294967295, %s2242_s0   ;;  %s2242_s0 = sphi %s2354_s0, %s33_s0  }
   0xf   : > { %s2715_s21 = sld [smem:[#allocation20_spill]]  ;;  %p1887_p0 = scmp.ge.s32.totalorder %s2242_s0, 1 }
  0x10   : > { %p468_p1 = scmp.lt.s32.totalorder %s2242_s0, 3  ;;  %p2002_p2 = scmp.eq.s32.totalorder %s2363_s22, 0 }
  0x11   : > { %s2244_s23 = smov [#allocation4]   ;;  %s2717_s15 = sld [smem:[#allocation23_spill]] }
  0x12   : > { %p2368_p3 = pnand %p1887_p0, %p468_p1  ;;  %s498_s24 = sshll.u32 %s2244_s23, 4  ;;  %s499_s24 = int_to_ptr.vmem [resolvable:$true] %s498_s24 }
  0x13   : > { %s2245_s28 = smov [#allocation7]   ;;  %s2246_s0 = smov 128  }
  0x14   : > { %p1983_p4 = pneg %p2368_p3  ;;  %s556_s29 = sshll.u32 %s2245_s28, 4  ;;  %s557_s29 = int_to_ptr.vmem [resolvable:$true] %s556_s29 }
  0x15   : > { %s496_s1 = sshll.u32 %s2715_s21, 4  ;;  %s2719_s21 = sld [smem:[#allocation18_spill]]  ;;  %s497_s1 = int_to_ptr.hbm [resolvable:$true] %s496_s1 }
  0x16   : > { %p2379_p5 = pnand %p2002_p2, %p1983_p4  ;;  %s2247_s19 = smov 8  }
  0x17   : > { %s554_s26 = sshll.u32 %s2717_s15, 4  ;;  %s2248_s25 = smov [#allocation2]   ;;  %s555_s26 = int_to_ptr.hbm [resolvable:$true] %s554_s26 }
  0x18   : > { %1989 = dma.hbm_to_vmem [thread:$0]  (!%p2379_p5), %s497_s1, 384, %s499_s24, [#allocation5], %s2246_s0, %s2246_s0, %s2247_s19  }
  0x19   : > { %1995 = dma.hbm_to_vmem [thread:$0]  (!%p2379_p5), %s555_s26, 384, %s557_s29, [#allocation8], %s2246_s0, %s2246_s0, %s2247_s19  }
  0x1a   : > { %s481_s3 = sshll.u32 %s2248_s25, 4  ;;  %s2249_s15 = smov 64   ;;  %s482_s3 = int_to_ptr.vmem [resolvable:$true] %s481_s3 }
  0x1b   : > { %s479_s23 = sshll.u32 %s2719_s21, 4  ;;  %s2250_s17 = smov 4   ;;  %s480_s23 = int_to_ptr.hbm [resolvable:$true] %s479_s23 }
  0x1c   : > { %1986 = dma.hbm_to_vmem [thread:$0]  (!%p2379_p5), %s480_s23, 192, %s482_s3, [#allocation3], %s2249_s15, %s2249_s15, %s2250_s17  }
  0x1d   : > { %s540_s20 = sshll.u32 %s2698_s14, 4  ;;  %s2251_s21 = smov [#allocation6]   ;;  %s541_s20 = int_to_ptr.hbm [resolvable:$true] %s540_s20 }
  0x1e   : > { %s542_s13 = sshll.u32 %s2251_s21, 4  ;;  %s569_s26 = sshll.u32 %s2700_s16, 4  ;;  %s543_s13 = int_to_ptr.vmem [resolvable:$true] %s542_s13  ;;  %s570_s26 = int_to_ptr.hbm [resolvable:$true] %s569_s26 }
  0x1f   : > { %1992 = dma.hbm_to_vmem [thread:$0]  (!%p2379_p5), %s541_s20, 384, %s543_s13, [#allocation5], %s2246_s0, %s2246_s0, %s2247_s19  }
  0x20   : > { %s2252_s29 = smov [#allocation9]   ;;  %s584_s17 = sshll.u32 %s2702_s18, 4  ;;  %s585_s17 = int_to_ptr.hbm [resolvable:$true] %s584_s17 }
  0x21   : > { %s571_s25 = sshll.u32 %s2252_s29, 4  ;;  %s2253_s23 = smov [#allocation10]   ;;  %s572_s25 = int_to_ptr.vmem [resolvable:$true] %s571_s25 }
  0x22   : > { %1998 = dma.hbm_to_vmem [thread:$0]  (!%p2379_p5), %s570_s26, 16, %s572_s25, [#allocation8]  }
  0x23   : > { %s586_s3 = sshll.u32 %s2253_s23, 4  ;;  %607 = sbr.rel (%p2368_p3) target bundleno = 1280 (0x500), region = 96  ;;  %s587_s3 = int_to_ptr.vmem [resolvable:$true] %s586_s3 }
  0x24   : > { %2001 = dma.hbm_to_vmem [thread:$0]  (!%p2379_p5), %s585_s17, 16, %s587_s3, [#allocation11]  }
  0x28   : > { %2225 = dma.done.wait (%p2002_p2), [#allocation3], 192  }
  0x29   : > { %2227 = vsyncadd (%p2002_p2), [#allocation3], 4294967104 }
  0x2a   : > { %2229 = dma.done.wait (%p2002_p2), [#allocation5], 768  }
  0x2b   : > { %2231 = vsyncadd (%p2002_p2), [#allocation5], 4294966528 }
  0x2c   : > { %2233 = dma.done.wait (%p2002_p2), [#allocation8], 400  }
  0x2d   : > { %2235 = vsyncadd (%p2002_p2), [#allocation8], 4294966896 }
  0x2e   : > { %2237 = dma.done.wait (%p2002_p2), [#allocation11], 16  }
  0x2f   : > { %2239 = vsyncadd (%p2002_p2), [#allocation11], 4294967280  ;;  %p689_p6 = scmp.lt.s32.totalorder %s2363_s22, 1  ;;  %vm728_vm0 = vcmask 1043456   ;;  %s2720_s0 = sld [smem:[#allocation17_spill]]  ;;  %vm707_vm1 = vcmask 1040384  }
  0x30   : > { %vm717_vm2 = vcmask 1046528   ;;  %v702_v0 = vld [vmem:[#allocation2 + $0x4] sm:$0xf]  ;;  %vm723_vm3 = vcmask 31744   ;;  %vm785_vm4 = vcmask 1045504   ;;  %v885_v21 = vld [vmem:[#allocation4 + $0x8] sm:$0xff] }
  0x31   : > { %s2728_s22 = smov (!%p689_p6, %s2363_s22), 1  ;;  %1958 = vmatpush.msk.msra.mxu1 %vm728_vm0, %v702_v0  ;;  %v701_v5 = vld [vmem:[#allocation2] sm:$0xf]  ;;  %v703_v6 = vld [vmem:[#allocation2 + $0x8] sm:$0xf]  ;;  %1906 = vmatpush.msk.msra.mxu0 %vm728_vm0, %v702_v0  ;;  %s2721_s30 = sld [smem:[#allocation19_spill]] }
  0x32   : > { %s1956_s11 = sshll.u32 %s2728_s22, 4  ;;  %1912 = vmatpush.msk.msra.mxu2 %vm728_vm0, %v703_v6  ;;  %v886_v22 = vld [vmem:[#allocation4 + $0x10] sm:$0xff]  ;;  %943 = vmatpush.msra.mxu3 %v885_v21  ;;  %v884_v29 = vld [vmem:[#allocation4] sm:$0xff]  ;;  %vm904_vm5 = vcmask 1042434   ;;  %vm906_vm6 = vcmask 1043459   ;;  %vm908_vm7 = vcmask 1044484  }
  0x33   : > { %1909 = vmatpush.msk.msrb.mxu1 %vm728_vm0, %v701_v5  ;;  %990 = vmatpush.msrb.mxu0 %v886_v22  ;;  %vm910_vm8 = vcmask 1045509   ;;  %vm912_vm9 = vcmask 1046534   ;;  %vm914_vm10 = vcmask 1047559   ;;  %vm925_vm11 = vcmask 64512   ;;  %s2724_s1 = sld [smem:[#allocation24_spill]] }
  0x34   : > { %965 = vmatpush.msrb.mxu3 %v884_v29  ;;  %v1029_v29 = vld [vmem:[%s2689_s5 + $0x8] sm:$0xff]  ;;  %vm1048_vm12 = vcmask 1044480   ;;  %vm1052_vm13 = vcmask 130048   ;;  %vm1151_vm14 = vcmask 261120   ;;  %s2725_s29 = sld [smem:[#allocation25_spill]] }
  0x35   : > { %s693_s2 = scalar_lea.vmem %s2720_s0, %s1956_s11  ;;  %1091 = vmatpush.msrb.mxu2 %v1029_v29 }
  0x36   : > { %v699_v1 = vld [vmem:[%s693_s2] sm:$0xff]  ;;  %v700_v2 = vld [vmem:[%s693_s2 + $0x8] sm:$0xff]  ;;  %s2722_s2 = sld [smem:[#allocation21_spill]] }
  0x37   : > { %v708_v3 = vrot.slane %v699_v1, 7  ;;  %v709_v4 = vrot.slane %v700_v2, 7  ;;  %v2032_v27 = vld [vmem:[%s2721_s30] ss:$0 sm:$0xff]  ;;  %s2723_s30 = sld [smem:[#allocation22_spill]] }
  0x39   : > { %v710_v7 = vsel %vm707_vm1, %v708_v3, %v709_v4  ;;  %v714_v8 = vsel %vm707_vm1, %v709_v4, 0.0  ;;  %v713_v9 = vsel %vm707_vm1, 0.0, %v708_v3 }
  0x3a   : > { %v719_v10 = vrot.slane %v710_v7, 1  ;;  %v721_v11 = vrot.slane %v714_v8, 1  ;;  %v786_v12 = vrot.slane %v713_v9, 2  ;;  %v787_v13 = vrot.slane %v710_v7, 2  ;;  %s698_s25 = scalar_lea.vmem %s2725_s29, %s1956_s11 }
  0x3b   : > { %v718_v14 = vrot.slane %v713_v9, 1  ;;  %v789_v18 = vrot.slane %v714_v8, 2 }
  0x3c   : > { %v722_v15 = vsel %vm717_vm2, %v719_v10, %v721_v11  ;;  %v788_v16 = vsel %vm785_vm4, %v786_v12, %v787_v13 }
  0x3d   : > { %1908 = vmatmul.msk.f32.vlgmr.msra.gmra.mxu1 %vm723_vm3, %v722_v15  ;;  %1913 = vmatmul.msk.f32.vlgmr.msra.gmra.mxu2 %vm723_vm3, %v788_v16  ;;  %v720_v17 = vsel %vm717_vm2, %v718_v14, %v719_v10  ;;  %v790_v19 = vsel %vm785_vm4, %v787_v13, %v789_v18 }
  0x3e   : > { %1907 = vmatmul.msk.f32.vlgmr.msra.gmra.mxu0 %vm723_vm3, %v720_v17 }
  0x45   : > { %1910 = vmatmul.msk.f32.vlgmr.msrb.gmra.mxu1 %vm723_vm3, %v713_v9  ;;  %1914 = vmatmul.msk.f32.gmra.mxu2 %vm723_vm3, %v790_v19 }
  0x4d   : > { %1911 = vmatmul.msk.f32.gmra.mxu1 %vm723_vm3, %v710_v7 }
  0xba   : > { %v752_v20 = vpop.f32.mrf.mxu1 }
  0xbb   : > { %v749_v23 = vpop.f32.mrf.mxu0 }
  0xc0   : > { %v815_v24 = vpop.f32.mrf.mxu2 }
  0xc2   : > { %v779_v25 = vpop.f32.mrf.mxu1 }
  0xc3   : > { %v780_v26 = vadd.f32 %v779_v25, %v749_v23 }
  0xc5   : > { %v821_v28 = vadd.f32 %v815_v24, %v780_v26 }
  0xc7   : > { %v826_v30 = vadd.f32 %v2032_v27, %v821_v28 }
  0xc8   : > { %v818_v37 = vpop.f32.mrf.mxu2 }
  0xc9   : > { %v828_v31 = vmax.f32 %v826_v30, 0.0  ;;  %v1031_v30 = vld [vmem:[%s2689_s5 + $0x18] sm:$0xff] }
  0xca   : > { %v782_v32 = vpop.f32.mrf.mxu1  ;;  %1069 = vmatpush.msra.mxu1 %v1031_v30 }
  0xcb   : > { %v832_v33 = vrot.slane %v828_v31, 2  ;;  %v833_v34 = vrot.slane %v828_v31, 4  ;;  %v834_v35 = vrot.slane %v828_v31, 6  ;;  %v2455_v36 = vrot.slane %v828_v31, 7 }
  0xcc   : > { %v783_v38 = vadd.f32 %v782_v32, %v752_v20  ;;  %v1033_v32 = vld [vmem:[%s2689_s5 + $0x28] sm:$0xff] }
  0xcd   : > { %v845_v39 = vrot.slane %v2455_v36, 2  ;;  %v1915_v40 = vrot.slane %v832_v33, 9  ;;  %v1916_v41 = vrot.slane %v833_v34, 9  ;;  %v1917_v43 = vrot.slane %v834_v35, 9 }
  0xce   : > { %v822_v42 = vadd.f32 %v818_v37, %v783_v38 }
  0xcf   : > { %v868_v44 = vadd.f32 %v845_v39, %v828_v31  ;;  %v869_v45 = vadd.f32 %v1915_v40, %v832_v33  ;;  %v870_v46 = vadd.f32 %v1916_v41, %v833_v34  ;;  %v871_v52 = vadd.f32 %v1917_v43, %v834_v35  ;;  %v1028_v31 = vld [vmem:[%s2689_s5] sm:$0xff]  ;;  %v1030_v33 = vld [vmem:[%s2689_s5 + $0x10] sm:$0xff] }
  0xd0   : > { %v827_v47 = vadd.f32 %v2032_v27, %v822_v42  ;;  %v1032_v34 = vld [vmem:[%s2689_s5 + $0x20] sm:$0xff]  ;;  %1092 = vmatpush.msrb.mxu2 %v1028_v31  ;;  %1070 = vmatpush.msra.mxu1 %v1030_v33  ;;  %v1136_v33 = vld [vmem:[%s2693_s9 + $0x8] sm:$0xff] }
  0xd1   : > { %v876_v48 = vmul.f32 0.5, %v868_v44  ;;  %v877_v49 = vmul.f32 0.5, %v869_v45  ;;  %v878_v50 = vmul.f32 0.5, %v870_v46  ;;  %v879_v1 = vmul.f32 0.5, %v871_v52  ;;  %v2033_v39 = vld [vmem:[%s2688_s4] ss:$0 sm:$0xff] }
  0xd2   : > { %v829_v51 = vmax.f32 %v827_v47, 0.0 }
  0xd3   : > { %v896_v53 = vperm.slane %v876_v48, 0  ;;  %v897_v54 = vperm.slane %v877_v49, 0  ;;  %v898_v59 = vperm.slane %v878_v50, 0  ;;  %v899_v12 = vperm.slane %v879_v1, 0 }
  0xd4   : > { %v835_v55 = vrot.slane %v829_v51, 2  ;;  %v836_v56 = vrot.slane %v829_v51, 4  ;;  %v2458_v57 = vrot.slane %v829_v51, 7  ;;  %v837_v58 = vrot.slane %v829_v51, 6 }
  0xd5   : > { %v905_v60 = vsel %vm904_vm5, %v897_v54, %v896_v53 }
  0xd6   : > { %v853_v61 = vrot.slane %v2458_v57, 2  ;;  %v1918_v62 = vrot.slane %v835_v55, 9  ;;  %v1919_v63 = vrot.slane %v836_v56, 9  ;;  %v1920_v0 = vrot.slane %v837_v58, 9 }
  0xd7   : > { %v2465_v2 = vsel %vm707_vm1, %v2455_v36, %v2458_v57  ;;  %v907_v7 = vsel %vm906_vm6, %v898_v59, %v905_v60 }
  0xd8   : > { %v872_v3 = vadd.f32 %v853_v61, %v829_v51  ;;  %v873_v4 = vadd.f32 %v1918_v62, %v835_v55  ;;  %v874_v5 = vadd.f32 %v1919_v63, %v836_v56  ;;  %v875_v6 = vadd.f32 %v1920_v0, %v837_v58 }
  0xd9   : > { %v909_v16 = vsel %vm908_vm7, %v899_v12, %v907_v7  ;;  %v1128_v12 = vld [vmem:[%s2691_s7 + $0x10] sm:$0xff] }
  0xda   : > { %v880_v8 = vmul.f32 0.5, %v872_v3  ;;  %v881_v9 = vmul.f32 0.5, %v873_v4  ;;  %v882_v10 = vmul.f32 0.5, %v874_v5  ;;  %v883_v11 = vmul.f32 0.5, %v875_v6 }
  0xdc   : > { %v900_v13 = vperm.slane %v880_v8, 0  ;;  %v901_v14 = vperm.slane %v881_v9, 0  ;;  %v903_v15 = vperm.slane %v883_v11, 0  ;;  %v902_v17 = vperm.slane %v882_v10, 0  ;;  %v1133_v9 = vld [vmem:[%s2691_s7 + $0x38] sm:$0xff]  ;;  %v1132_v11 = vld [vmem:[%s2691_s7 + $0x30] sm:$0xff] }
  0xdd   : > { %1187 = vmatpush.msrb.mxu1 %v1133_v9  ;;  %v1129_v10 = vld [vmem:[%s2691_s7 + $0x18] sm:$0xff] }
  0xde   : > { %v911_v18 = vsel %vm910_vm8, %v900_v13, %v909_v16  ;;  %v919_v20 = vsel %vm707_vm1, %v903_v15, 0.0  ;;  %1167 = vmatpush.msra.mxu0 %v1129_v10  ;;  %v1131_v13 = vld [vmem:[%s2691_s7 + $0x28] sm:$0xff]  ;;  %v1130_v15 = vld [vmem:[%s2691_s7 + $0x20] sm:$0xff] }
  0xdf   : > { %v913_v19 = vsel %vm912_vm9, %v901_v14, %v911_v18  ;;  %v923_v24 = vrot.slane %v919_v20, 1  ;;  %v971_v26 = vrot.slane %v919_v20, 2  ;;  %1188 = vmatpush.msrb.mxu1 %v1132_v11  ;;  %v1127_v14 = vld [vmem:[%s2691_s7 + $0x8] sm:$0xff]  ;;  %v1126_v16 = vld [vmem:[%s2691_s7] sm:$0xff]  ;;  %v1143_v18 = vld [vmem:[%s2694_s10 + $0x10] sm:$0xff] }
  0xe0   : > { %v915_v21 = vsel %vm914_vm10, %v902_v17, %v913_v19  ;;  %1168 = vmatpush.msra.mxu0 %v1128_v12  ;;  %v1144_v17 = vld [vmem:[%s2694_s10 + $0x18] sm:$0xff] }
  0xe1   : > { %v918_v22 = vsel %vm707_vm1, 0.0, %v915_v21  ;;  %1189 = vmatpush.msrb.mxu1 %v1131_v13  ;;  %v1396_v13 = vld [vmem:[%s2696_s12 + $0x18] sm:$0xff] }
  0xe2   : > { %v922_v23 = vrot.slane %v918_v22, 1  ;;  %v970_v25 = vrot.slane %v918_v22, 2  ;;  %1169 = vmatpush.msra.mxu0 %v1127_v14  ;;  %v1394_v14 = vld [vmem:[%s2696_s12 + $0x8] sm:$0xff] }
  0xe3   : > { %1190 = vmatpush.msrb.mxu1 %v1130_v15  ;;  %v1395_v15 = vld [vmem:[%s2696_s12 + $0x10] sm:$0xff] }
  0xe4   : > { %v924_v27 = vsel %vm717_vm2, %v922_v23, %v923_v24  ;;  %v972_v28 = vsel %vm785_vm4, %v970_v25, %v971_v26  ;;  %1170 = vmatpush.msra.mxu0 %v1126_v16  ;;  %v1393_v16 = vld [vmem:[%s2696_s12] sm:$0xff] }
  0xe5   : > { %1921 = vmatmul.msk.f32.vlgmr.msra.gmra.mxu3 %vm925_vm11, %v924_v27  ;;  %1923 = vmatmul.msk.f32.vlgmr.msrb.gmra.mxu0 %vm925_vm11, %v972_v28 }
  0xe6   : > { %1114 = vmatpush.msra.mxu3 %v1033_v32  ;;  %v1138_v32 = vld [vmem:[%s2693_s9 + $0x18] sm:$0xff] }
  0xe7   : > { %1255 = vmatpush.msra.mxu2 %v1138_v32  ;;  %v2621_v32 = vsel %vm707_vm1, 0.0, %v2455_v36  ;;  %v1399_v36 = vld [vmem:[#allocation6 + $0x8] sm:$0xff] }
  0xe8   : > { %1115 = vmatpush.msra.mxu3 %v1032_v34  ;;  %v1137_v34 = vld [vmem:[%s2693_s9 + $0x10] sm:$0xff] }
  0xe9   : > { %1256 = vmatpush.msra.mxu2 %v1137_v34  ;;  %v1632_v34 = vrot.slane %v2621_v32, 1 }
  0xed   : > { %1922 = vmatmul.msk.f32.vlgmr.msrb.gmra.mxu3 %vm925_vm11, %v918_v22  ;;  %v2034_v22 = vld [vmem:[%s2690_s6] ss:$0 sm:$0xff] }
  0xee   : > { %1277 = vmatpush.msrb.mxu3 %v1136_v33  ;;  %v1633_v33 = vrot.slane %v2465_v2, 1 }
 0x162   : > { %v992_v40 = vpop.f32.mrf.mxu0 }
 0x168   : > { %v945_v35 = vpop.f32.mrf.mxu3 }
 0x170   : > { %v967_v37 = vpop.f32.mrf.mxu3 }
 0x171   : > { %v968_v38 = vadd.f32 %v967_v37, %v945_v35  ;;  %v1135_v35 = vld [vmem:[%s2693_s9] sm:$0xff]  ;;  %v1140_v37 = vld [vmem:[%s2693_s9 + $0x28] sm:$0xff] }
 0x172   : > { %1278 = vmatpush.msrb.mxu3 %v1135_v35  ;;  %1302 = vmatpush.msrb.mxu0 %v1140_v37  ;;  %v1634_v35 = vsel %vm717_vm2, %v1632_v34, %v1633_v33  ;;  %v2629_v37 = vsel %vm707_vm1, %v2458_v57, 0.0  ;;  %v1692_v34 = vrot.slane %v2465_v2, 2 }
 0x173   : > { %v995_v41 = vadd.f32 %v992_v40, %v968_v38  ;;  %v1139_v38 = vld [vmem:[%s2693_s9 + $0x20] sm:$0xff]  ;;  %v1146_v40 = vld [vmem:[%s2694_s10 + $0x28] sm:$0xff] }
 0x174   : > { %1303 = vmatpush.msrb.mxu0 %v1139_v38  ;;  %v1635_v38 = vrot.slane %v2629_v37, 1 }
 0x175   : > { %v999_v42 = vadd.f32 %v2033_v39, %v995_v41  ;;  %v1142_v39 = vld [vmem:[%s2694_s10 + $0x8] sm:$0xff]  ;;  %v1141_v41 = vld [vmem:[%s2694_s10] sm:$0xff] }
 0x177   : > { %v1000_v43 = vmax.f32 %v999_v42, 0.0  ;;  %v1145_v42 = vld [vmem:[%s2694_s10 + $0x20] sm:$0xff] }
 0x179   : > { %v2497_v44 = vrot.slane %v1000_v43, 7  ;;  %v1002_v45 = vrot.slane %v1000_v43, 2  ;;  %v1003_v46 = vrot.slane %v1000_v43, 4  ;;  %v1004_v47 = vrot.slane %v1000_v43, 6 }
 0x17b   : > { %v1009_v48 = vrot.slane %v2497_v44, 2  ;;  %v1924_v49 = vrot.slane %v1002_v45, 9  ;;  %v1925_v50 = vrot.slane %v1003_v46, 9  ;;  %v1926_v51 = vrot.slane %v1004_v47, 9 }
 0x17c   : > { %v2542_v27 = vsel %vm707_vm1, 0.0, %v2497_v44  ;;  %v2546_v28 = vsel %vm707_vm1, %v2497_v44, 0.0 }
 0x17d   : > { %v1020_v52 = vadd.f32 %v1009_v48, %v1000_v43  ;;  %v1021_v53 = vadd.f32 %v1924_v49, %v1002_v45  ;;  %v1022_v54 = vadd.f32 %v1925_v50, %v1003_v46  ;;  %v1023_v55 = vadd.f32 %v1926_v51, %v1004_v47  ;;  %v2035_v43 = vld [vmem:[%s2692_s8] ss:$0 sm:$0xff] }
 0x17e   : > { %v1314_v29 = vrot.slane %v2542_v27, 1  ;;  %v1315_v30 = vrot.slane %v2546_v28, 1  ;;  %v1361_v10 = vrot.slane %v2542_v27, 2  ;;  %v1362_v11 = vrot.slane %v2546_v28, 2  ;;  %v2036_v28 = vld [vmem:[%s2722_s2] ss:$0 sm:$0xff] }
 0x17f   : > { %v1024_v56 = vmul.f32 0.5, %v1020_v52  ;;  %v1025_v58 = vmul.f32 0.5, %v1021_v53  ;;  %v1026_v59 = vmul.f32 0.5, %v1022_v54  ;;  %v1027_v60 = vmul.f32 0.5, %v1023_v55 }
 0x180   : > { %v1316_v31 = vsel %vm717_vm2, %v1314_v29, %v1315_v30  ;;  %v1363_v12 = vsel %vm785_vm4, %v1361_v10, %v1362_v11 }
 0x181   : > { %v1039_v61 = vperm.slane %v1024_v56, 0  ;;  %v1040_v62 = vperm.slane %v1025_v58, 0  ;;  %v1041_v63 = vperm.slane %v1026_v59, 0  ;;  %v1042_v0 = vperm.slane %v1027_v60, 0 }
 0x183   : > { %v1043_v1 = vsel %vm904_vm5, %v1040_v62, %v1039_v61 }
 0x184   : > { %v1044_v3 = vsel %vm906_vm6, %v1041_v63, %v1043_v1 }
 0x185   : > { %v1045_v4 = vsel %vm908_vm7, %v1042_v0, %v1044_v3 }
 0x186   : > { %v1047_v5 = vsel %vm707_vm1, 0.0, %v1045_v4 }
 0x187   : > { %v1049_v6 = vsel %vm1048_vm12, %v1047_v5, 0.0 }
 0x188   : > { %v1051_v7 = vrot.slane %v1049_v6, 1  ;;  %1928 = vmatmul.msk.f32.vlgmr.msrb.gmra.mxu2 %vm1052_vm13, %v1049_v6  ;;  %v1097_v8 = vrot.slane %v1049_v6, 2 }
 0x189   : > { %1355 = vmatpush.msrb.mxu2 %v1142_v39  ;;  %v1636_v39 = vsel %vm717_vm2, %v1633_v33, %v1635_v38 }
 0x18a   : > { %1927 = vmatmul.msk.f32.vlgmr.msra.gmra.mxu1 %vm1052_vm13, %v1051_v7  ;;  %1929 = vmatmul.msk.f32.vlgmr.msra.gmra.mxu3 %vm1052_vm13, %v1097_v8 }
 0x18b   : > { %1333 = vmatpush.msra.mxu1 %v1144_v17  ;;  %1380 = vmatpush.msra.mxu3 %v1146_v40  ;;  %v1402_v17 = vld [vmem:[#allocation7 + $0x8] sm:$0xff] }
 0x18c   : > { %1356 = vmatpush.msrb.mxu2 %v1141_v41  ;;  %v1398_v40 = vld [vmem:[#allocation6] sm:$0xff]  ;;  %v1400_v41 = vld [vmem:[#allocation6 + $0x10] sm:$0xff] }
 0x18d   : > { %1334 = vmatpush.msra.mxu1 %v1143_v18  ;;  %1381 = vmatpush.msra.mxu3 %v1145_v42  ;;  %v2037_v42 = vld [vmem:[%s2723_s30] ss:$0 sm:$0xff] }
 0x207   : > { %v1072_v19 = vpop.f32.mrf.mxu1 }
 0x20b   : > { %v1094_v20 = vpop.f32.mrf.mxu2 }
 0x20c   : > { %v1095_v21 = vadd.f32 %v1094_v20, %v1072_v19 }
 0x20d   : > { %v1117_v23 = vpop.f32.mrf.mxu3 }
 0x20e   : > { %v1120_v24 = vadd.f32 %v1117_v23, %v1095_v21 }
 0x210   : > { %v1124_v25 = vadd.f32 %v2034_v22, %v1120_v24 }
 0x212   : > { %v1125_v26 = vmax.f32 %v1124_v25, 0.0 }
 0x214   : > { %1930 = vmatmul.msk.f32.vlgmr.msra.gmra.mxu0 %vm1151_vm14, %v1125_v26  ;;  %1931 = vmatmul.msk.f32.vlgmr.msrb.gmra.mxu1 %vm1151_vm14, %v1125_v26 }
 0x215   : > { %1445 = vmatpush.msrb.mxu1 %v1396_v13  ;;  %1425 = vmatpush.msra.mxu0 %v1394_v14 }
 0x217   : > { %1446 = vmatpush.msrb.mxu1 %v1395_v15  ;;  %1426 = vmatpush.msra.mxu0 %v1393_v16 }
 0x21c   : > { %1935 = vmatmul.msk.f32.vlgmr.msra.gmra.mxu1 %vm1052_vm13, %v1316_v31 }
 0x21d   : > { %1656 = vmatpush.msra.mxu1 %v1402_v17 }
 0x291   : > { %v1172_v44 = vpop.f32.mrf.mxu0  ;;  %v1192_v45 = vpop.f32.mrf.mxu1 }
 0x292   : > { %v1173_v46 = vadd.f32 %v2035_v43, %v1172_v44  ;;  %v1193_v47 = vadd.f32 %v2035_v43, %v1192_v45  ;;  %v1401_v43 = vld [vmem:[#allocation7] sm:$0xff]  ;;  %v1403_v44 = vld [vmem:[#allocation7 + $0x10] sm:$0xff] }
 0x294   : > { %v1203_v48 = vrot.slane %v1193_v47, 1  ;;  %v1204_v49 = vrot.slane %v1193_v47, 2  ;;  %v1205_v50 = vrot.slane %v1193_v47, 3  ;;  %v1206_v51 = vperm.slane %v1193_v47, 0 }
 0x295   : > { %v1196_v52 = vrot.slane %v1173_v46, 1  ;;  %v1197_v53 = vrot.slane %v1173_v46, 2  ;;  %v1198_v55 = vrot.slane %v1173_v46, 3 }
 0x296   : > { %v1207_v54 = vperm.slane %v1203_v48, 0  ;;  %v1208_v56 = vperm.slane %v1204_v49, 0  ;;  %v1209_v58 = vperm.slane %v1205_v50, 0  ;;  %v1214_v59 = vsel %vm707_vm1, %v1173_v46, %v1206_v51 }
 0x297   : > { %1222 = vst [vmem:[#allocation1] ss:$4 sm:$0xff] %v1214_v59 }
 0x298   : > { %v1215_v60 = vsel %vm707_vm1, %v1196_v52, %v1207_v54  ;;  %v1216_v61 = vsel %vm707_vm1, %v1197_v53, %v1208_v56  ;;  %v1217_v62 = vsel %vm707_vm1, %v1198_v55, %v1209_v58 }
 0x299   : > { %1224 = vst [vmem:[#allocation1 + $0x1] ss:$4 sm:$0xff] %v1215_v60  ;;  %v1336_v21 = vpop.f32.mrf.mxu1 }
 0x29a   : > { %1226 = vst [vmem:[#allocation1 + $0x2] ss:$4 sm:$0xff] %v1216_v61 }
 0x29b   : > { %1228 = vst [vmem:[#allocation1 + $0x3] ss:$4 sm:$0xff] %v1217_v62 }
 0x2a2   : > { %v1229_v63 = vld.sshfl [vmem:[#allocation1] sm:$0xff pattern:$0x73625140] }
 0x2a3   : > { %v1230_v0 = vrot.slane %v1229_v63, 7 }
 0x2a5   : > { %v1232_v1 = vsel %vm707_vm1, 0.0, %v1230_v0  ;;  %v1233_v3 = vsel %vm707_vm1, %v1230_v0, 0.0 }
 0x2a6   : > { %v1236_v4 = vrot.slane %v1232_v1, 1  ;;  %1933 = vmatmul.msk.f32.vlgmr.msrb.gmra.mxu3 %vm1052_vm13, %v1232_v1  ;;  %v1283_v5 = vrot.slane %v1232_v1, 2  ;;  %v1237_v6 = vrot.slane %v1233_v3, 1  ;;  %v1284_v7 = vrot.slane %v1233_v3, 2 }
 0x2a7   : > { %1583 = vmatpush.msrb.mxu3 %v1398_v40  ;;  %v1734_v40 = vld [vmem:[%s2724_s1] sm:$0xff] }
 0x2a8   : > { %v1238_v8 = vsel %vm717_vm2, %v1236_v4, %v1237_v6  ;;  %v1285_v9 = vsel %vm785_vm4, %v1283_v5, %v1284_v7 }
 0x2a9   : > { %1932 = vmatmul.msk.f32.vlgmr.msra.gmra.mxu2 %vm1052_vm13, %v1238_v8  ;;  %1934 = vmatmul.msk.f32.vlgmr.msrb.gmra.mxu0 %vm1052_vm13, %v1285_v9 }
 0x2aa   : > { %1556 = vmatpush.msra.mxu2 %v1399_v36  ;;  %1615 = vmatpush.msrb.mxu0 %v1400_v41 }
 0x2ae   : > { %1937 = vmatmul.msk.f32.vlgmr.msra.gmra.mxu3 %vm1052_vm13, %v1363_v12 }
 0x2af   : > { %1715 = vmatpush.msra.mxu3 %v1403_v44 }
 0x2b1   : > { %1936 = vmatmul.msk.f32.vlgmr.msrb.gmra.mxu2 %vm1052_vm13, %v2542_v27 }
 0x2b2   : > { %1683 = vmatpush.msrb.mxu2 %v1401_v43 }
 0x326   : > { %v1305_v24 = vpop.f32.mrf.mxu0 }
 0x329   : > { %v1280_v18 = vpop.f32.mrf.mxu3 }
 0x32c   : > { %v1258_v19 = vpop.f32.mrf.mxu2 }
 0x32d   : > { %v1281_v20 = vadd.f32 %v1280_v18, %v1258_v19 }
 0x32f   : > { %v1308_v26 = vadd.f32 %v1305_v24, %v1281_v20 }
 0x331   : > { %v1383_v25 = vpop.f32.mrf.mxu3 }
 0x334   : > { %v1358_v22 = vpop.f32.mrf.mxu2 }
 0x335   : > { %v1359_v23 = vadd.f32 %v1358_v22, %v1336_v21 }
 0x337   : > { %v1386_v27 = vadd.f32 %v1383_v25, %v1359_v23 }
 0x339   : > { %v1387_v29 = vadd.f32 %v1386_v27, %v1308_v26 }
 0x33b   : > { %v1391_v30 = vadd.f32 %v2036_v28, %v1387_v29 }
 0x33d   : > { %v1392_v31 = vmax.f32 %v1391_v30, 0.0 }
 0x33f   : > { %1938 = vmatmul.msk.f32.vlgmr.msra.gmra.mxu0 %vm1052_vm13, %v1392_v31  ;;  %1939 = vmatmul.msk.f32.vlgmr.msrb.gmra.mxu1 %vm1052_vm13, %v1392_v31 }
 0x340   : > { %1760 = vmatpush.msra.mxu0 %v1734_v40 }
 0x347   : > { %1946 = vmatmul.msk.f32.vlgmr.msra.gmra.mxu1 %vm925_vm11, %v1634_v35  ;;  %v1691_v35 = vrot.slane %v2621_v32, 2 }
 0x349   : > { %v1693_v38 = vsel %vm785_vm4, %v1691_v35, %v1692_v34 }
 0x34f   : > { %1947 = vmatmul.msk.f32.gmra.mxu1 %vm925_vm11, %v1636_v39  ;;  %v1694_v39 = vrot.slane %v2629_v37, 2 }
 0x351   : > { %v1695_v36 = vsel %vm785_vm4, %v1692_v34, %v1694_v39 }
 0x3bc   : > { %v1428_v57 = vpop.f32.mrf.mxu0  ;;  %v1448_v45 = vpop.f32.mrf.mxu1 }
 0x3bd   : > { %v1429_v46 = vadd.f32 %v2037_v42, %v1428_v57  ;;  %v1449_v47 = vadd.f32 %v2037_v42, %v1448_v45 }
 0x3bf   : > { %v1455_v48 = vrot.slane %v1429_v46, 4  ;;  %v1456_v49 = vrot.slane %v1429_v46, 5  ;;  %v1467_v50 = vrot.slane %v1449_v47, 1  ;;  %v1468_v51 = vrot.slane %v1449_v47, 2 }
 0x3c0   : > { %v1469_v52 = vrot.slane %v1449_v47, 3  ;;  %v1470_v53 = vrot.slane %v1449_v47, 4  ;;  %v1471_v54 = vrot.slane %v1449_v47, 5  ;;  %v1457_v55 = vrot.slane %v1429_v46, 6 }
 0x3c1   : > { %v1472_v56 = vrot.slane %v1449_v47, 6  ;;  %v1473_v58 = vrot.slane %v1449_v47, 7  ;;  %v1474_v59 = vperm.slane %v1449_v47, 0  ;;  %v1458_v60 = vrot.slane %v1429_v46, 7 }
 0x3c2   : > { %v1475_v61 = vperm.slane %v1467_v50, 0  ;;  %v1478_v62 = vperm.slane %v1470_v53, 0  ;;  %v1479_v63 = vperm.slane %v1471_v54, 0  ;;  %v1476_v0 = vperm.slane %v1468_v51, 0  ;;  %v2038_v50 = vld [vmem:[#allocation9] ss:$0 sm:$0xff] }
 0x3c3   : > { %v1480_v1 = vperm.slane %v1472_v56, 0  ;;  %v1481_v3 = vperm.slane %v1473_v58, 0  ;;  %v1490_v4 = vsel %vm707_vm1, %v1429_v46, %v1474_v59  ;;  %v1452_v5 = vrot.slane %v1429_v46, 1 }
 0x3c4   : > { %v1477_v6 = vperm.slane %v1469_v52, 0  ;;  %v1494_v7 = vsel %vm707_vm1, %v1455_v48, %v1478_v62  ;;  %v1495_v8 = vsel %vm707_vm1, %v1456_v49, %v1479_v63  ;;  %1506 = vst [vmem:[#allocation1] ss:$4 sm:$0xff] %v1490_v4  ;;  %v1453_v9 = vrot.slane %v1429_v46, 2  ;;  %v1658_v57 = vpop.f32.mrf.mxu1 }
 0x3c5   : > { %v1496_v10 = vsel %vm707_vm1, %v1457_v55, %v1480_v1  ;;  %v1497_v11 = vsel %vm707_vm1, %v1458_v60, %v1481_v3  ;;  %1514 = vst [vmem:[#allocation1 + $0x20] ss:$4 sm:$0xff] %v1494_v7  ;;  %v1454_v12 = vrot.slane %v1429_v46, 3  ;;  %v1491_v13 = vsel %vm707_vm1, %v1452_v5, %v1475_v61  ;;  %v2039_v1 = vld [vmem:[#allocation10] ss:$0 sm:$0xff] }
 0x3c6   : > { %1516 = vst [vmem:[#allocation1 + $0x21] ss:$4 sm:$0xff] %v1495_v8  ;;  %v1492_v14 = vsel %vm707_vm1, %v1453_v9, %v1476_v0 }
 0x3c7   : > { %1518 = vst [vmem:[#allocation1 + $0x22] ss:$4 sm:$0xff] %v1496_v10  ;;  %v1493_v15 = vsel %vm707_vm1, %v1454_v12, %v1477_v6 }
 0x3c8   : > { %1520 = vst [vmem:[#allocation1 + $0x23] ss:$4 sm:$0xff] %v1497_v11 }
 0x3c9   : > { %1508 = vst [vmem:[#allocation1 + $0x1] ss:$4 sm:$0xff] %v1491_v13 }
 0x3ca   : > { %1510 = vst [vmem:[#allocation1 + $0x2] ss:$4 sm:$0xff] %v1492_v14 }
 0x3cb   : > { %1512 = vst [vmem:[#allocation1 + $0x3] ss:$4 sm:$0xff] %v1493_v15 }
 0x3cc   : > { %v1661_v53 = vpop.f32.mrf.mxu1 }
 0x3cf   : > { %v1522_v16 = vld.sshfl [vmem:[#allocation1 + $0x20] sm:$0xff pattern:$0x73625140] }
 0x3d0   : > { %v1524_v17 = vrot.slane %v1522_v16, 7 }
 0x3d2   : > { %v1521_v18 = vld.sshfl [vmem:[#allocation1] sm:$0xff pattern:$0x73625140]  ;;  %v1529_v28 = vsel %vm707_vm1, %v1524_v17, 0.0 }
 0x3d3   : > { %v1523_v19 = vrot.slane %v1521_v18, 7  ;;  %v1535_v29 = vrot.slane %v1529_v28, 1  ;;  %v1594_v30 = vrot.slane %v1529_v28, 2 }
 0x3d5   : > { %v1525_v20 = vsel %vm707_vm1, %v1523_v19, %v1524_v17  ;;  %v1528_v21 = vsel %vm707_vm1, 0.0, %v1523_v19 }
 0x3d6   : > { %v1532_v22 = vrot.slane %v1528_v21, 1  ;;  %1942 = vmatmul.msk.f32.vlgmr.msrb.gmra.mxu3 %vm925_vm11, %v1528_v21  ;;  %v1591_v23 = vrot.slane %v1528_v21, 2  ;;  %v1533_v24 = vrot.slane %v1525_v20, 1  ;;  %v1592_v25 = vrot.slane %v1525_v20, 2 }
 0x3d8   : > { %v1534_v26 = vsel %vm717_vm2, %v1532_v22, %v1533_v24  ;;  %v1593_v27 = vsel %vm785_vm4, %v1591_v23, %v1592_v25  ;;  %v1536_v31 = vsel %vm717_vm2, %v1533_v24, %v1535_v29  ;;  %v1595_v33 = vsel %vm785_vm4, %v1592_v25, %v1594_v30 }
 0x3d9   : > { %1940 = vmatmul.msk.f32.vlgmr.msra.gmra.mxu2 %vm925_vm11, %v1534_v26  ;;  %1944 = vmatmul.msk.f32.vlgmr.msrb.gmra.mxu0 %vm925_vm11, %v1593_v27 }
 0x3de   : > { %1943 = vmatmul.msk.f32.gmra.mxu3 %vm925_vm11, %v1525_v20 }
 0x3e1   : > { %1941 = vmatmul.msk.f32.gmra.mxu2 %vm925_vm11, %v1536_v31  ;;  %1945 = vmatmul.msk.f32.gmra.mxu0 %vm925_vm11, %v1595_v33 }
 0x3e6   : > { %1950 = vmatmul.msk.f32.vlgmr.msra.gmra.mxu3 %vm925_vm11, %v1693_v38 }
 0x3e9   : > { %1948 = vmatmul.msk.f32.vlgmr.msrb.gmra.mxu2 %vm925_vm11, %v2621_v32 }
 0x3ee   : > { %1951 = vmatmul.msk.f32.gmra.mxu3 %vm925_vm11, %v1695_v36 }
 0x3f1   : > { %1949 = vmatmul.msk.f32.gmra.mxu2 %vm925_vm11, %v2465_v2 }
 0x456   : > { %v1617_v32 = vpop.f32.mrf.mxu0 }
 0x459   : > { %v1585_v41 = vpop.f32.mrf.mxu3 }
 0x45c   : > { %v1558_v42 = vpop.f32.mrf.mxu2 }
 0x45d   : > { %v1586_v45 = vadd.f32 %v1585_v41, %v1558_v42 }
 0x45e   : > { %v1620_v58 = vpop.f32.mrf.mxu0 }
 0x45f   : > { %v1623_v48 = vadd.f32 %v1617_v32, %v1586_v45 }
 0x461   : > { %v1588_v43 = vpop.f32.mrf.mxu3 }
 0x464   : > { %v1561_v44 = vpop.f32.mrf.mxu2 }
 0x465   : > { %v1589_v2 = vadd.f32 %v1588_v43, %v1561_v44 }
 0x467   : > { %v1624_v60 = vadd.f32 %v1620_v58, %v1589_v2 }
 0x469   : > { %v1717_v37 = vpop.f32.mrf.mxu3 }
 0x46c   : > { %v1685_v46 = vpop.f32.mrf.mxu2 }
 0x46d   : > { %v1686_v47 = vadd.f32 %v1685_v46, %v1658_v57 }
 0x46f   : > { %v1723_v49 = vadd.f32 %v1717_v37, %v1686_v47 }
 0x471   : > { %v1725_v51 = vadd.f32 %v1723_v49, %v1623_v48  ;;  %v1720_v59 = vpop.f32.mrf.mxu3 }
 0x473   : > { %v1730_v52 = vadd.f32 %v2038_v50, %v1725_v51 }
 0x474   : > { %v1688_v54 = vpop.f32.mrf.mxu2 }
 0x475   : > { %v1732_v55 = vmax.f32 %v1730_v52, 0.0  ;;  %v1689_v56 = vadd.f32 %v1688_v54, %v1661_v53 }
 0x477   : > { %v1724_v61 = vadd.f32 %v1720_v59, %v1689_v56  ;;  %1952 = vmatmul.msk.f32.vlgmr.msra.gmra.mxu0 %vm925_vm11, %v1732_v55 }
 0x479   : > { %v1726_v62 = vadd.f32 %v1724_v61, %v1624_v60 }
 0x47b   : > { %v1731_v63 = vadd.f32 %v2038_v50, %v1726_v62 }
 0x47d   : > { %v1733_v0 = vmax.f32 %v1731_v63, 0.0 }
 0x47f   : > { %1953 = vmatmul.msk.f32.gmra.mxu0 %vm925_vm11, %v1733_v0 }
 0x4f4   : > { %v1762_v3 = vpop.f32.mrf.mxu0 }
 0x4f5   : > { %v1763_v4 = vadd.f32 %v2039_v1, %v1762_v3 }
 0x4f7   : > { %1768 = vst.msk [vmem:[%s698_s25] sm:$0xff] %vm723_vm3, %v1763_v4 }
 0x4fc   : > { %v1765_v5 = vpop.f32.mrf.mxu0 }
 0x4fd   : > { %v1766_v6 = vadd.f32 %v2039_v1, %v1765_v5 }
 0x4ff   : > { %1769 = vst.msk [vmem:[%s698_s25 + $0x8] sm:$0xff] %vm723_vm3, %v1766_v6 }
 0x500 PF: > { %s2726_s15 = sld [smem:[#allocation16_spill]] }
 0x506   : > { %s33_s0 = sadd.s32 1, %s2726_s15  }
 0x507   : > { %p30_p7 = scmp.ge.s32.totalorder %s33_s0, 4  }
 0x509   :  { %32 = sbr.rel (!%p30_p7) target bundleno = 14 (0xe), region = 161 }
 0x50e   :  { %1791 = vsyncpa [#allocation3], 1 }
 0x50f   :  { %1793 = vsyncpa [#allocation3 + $0x1], 1 }
 0x510   :  { %1794 = vsyncpa [#allocation5], 1 }
 0x511   :  { %1795 = vsyncpa [#allocation8], 1 }
 0x512   :  { %1796 = vsyncpa [#allocation11], 1 }

</bundles_post_ra>
